<compile_context>
chip_gen: v7x
topology: tpu7x:2x2x1
jax: 0.10.0
libtpu: 0.0.40
codegen_flags: <defaults>
</compile_context>

<pallas_src>
import jax
import jax.numpy as jnp
from jax.experimental import pallas as pl
from jax.experimental.pallas import tpu as pltpu


def _round_up(a, m):
    return (a + m - 1) // m * m


# --------------------------------------------------------------------------
# Fused per-step kernel: LSTM step + additive attention score
# --------------------------------------------------------------------------
def _decoder_step_kernel(x_ref, h0_ref, c0_ref, pg_ref, v_ref,
                         wih_ref, whh_ref, wl_ref, bl_ref,
                         logits_ref, h1_ref, c1_ref):
    # x, h0          : (B, H)      matmul dtype (f32 or bf16)
    # c0             : (B, Hp)     f32, zero-padded beyond H
    # pg             : (B, H, L)   f32, precomputed Conv1d(emb_graph)+bias
    # v              : (B, 1, H)   f32, attention vector V broadcast over batch
    # wih, whh       : (H, 4*Hp)   gate-blocked (i,f,g,o), 128-lane-aligned blocks
    # wl             : (Hp, H)     Linear weight^T, zero rows beyond H
    # bl             : (1, H)      f32
    # logits         : (B, L)      f32 (lane-dense, L on lanes)
    # h1, c1         : (B, Hp)     f32
    B, H, L = pg_ref.shape
    Hp = c0_ref.shape[1]

    # ---- LSTM step: all four gates from two fused MXU matmuls ----
    gates = (jnp.dot(x_ref[...], wih_ref[...], preferred_element_type=jnp.float32)
             + jnp.dot(h0_ref[...], whh_ref[...], preferred_element_type=jnp.float32))
    # Gate blocks start at multiples of Hp (multiple of 128) -> lane-aligned slices.
    i = jax.nn.sigmoid(gates[:, 0 * Hp:1 * Hp])
    f = jax.nn.sigmoid(gates[:, 1 * Hp:2 * Hp])
    g = jnp.tanh(gates[:, 2 * Hp:3 * Hp])
    o = jax.nn.sigmoid(gates[:, 3 * Hp:4 * Hp])

    c1 = f * c0_ref[...] + i * g          # padded tail stays exactly 0
    h1 = o * jnp.tanh(c1)                 # padded tail stays exactly 0
    c1_ref[...] = c1
    h1_ref[...] = h1

    # ---- Additive attention on the fresh h1 (still in VMEM) ----
    # proj_hidden: (B, H); zero rows of wl absorb the padded tail of h1.
    ph = jnp.dot(h1.astype(wl_ref.dtype), wl_ref[...],
                 preferred_element_type=jnp.float32) + bl_ref[...]
    # tanh(pg + ph) in the Conv1d-native (B, H, L) layout: the ph broadcast is
    # a cheap lane-broadcast (flash-attention m_i pattern), no reshape needed.
    t = jnp.tanh(pg_ref[...] + ph[:, :, None])                      # (B, H, L)
    # logits[b, l] = sum_h V[h] * t[b, h, l]  -> batched MXU contraction,
    # result already lane-dense with L on lanes.
    u = jnp.einsum('boh,bhl->bol', v_ref[...], t,
                   preferred_element_type=jnp.float32)              # (B, 1, L)
    logits_ref[...] = u[:, 0, :]


# --------------------------------------------------------------------------
# One-time preprocessing (hoisted out of the decode loop)
# --------------------------------------------------------------------------
def preprocess_params(params, matmul_dtype=jnp.float32):
    """Transpose / pad weights once into the layouts the kernel consumes."""
    H = params["w_lin"].shape[0]
    Hp = _round_up(H, 128)   # per-gate column stride; == H when H % 128 == 0

    def gate_blocked(w):
        # PyTorch LSTM weight (4H, H_in), gate order i,f,g,o  ->  (H_in, 4*Hp)
        # with gate k occupying columns [k*Hp, k*Hp + H) and zeros elsewhere.
        w4 = w.reshape(4, H, H)                                     # (gate, out, in)
        w4p = jnp.zeros((4, Hp, H), w.dtype).at[:, :H, :].set(w4)   # (gate, Hp, in)
        return jnp.transpose(w4p, (2, 0, 1)).reshape(H, 4 * Hp).astype(matmul_dtype)

    wl_T = jnp.zeros((Hp, H), params["w_lin"].dtype).at[:H, :].set(params["w_lin"].T)
    return dict(
        wih_T=gate_blocked(params["w_ih"]),           # (H, 4*Hp)
        whh_T=gate_blocked(params["w_hh"]),           # (H, 4*Hp)
        wl_T=wl_T.astype(matmul_dtype),               # (Hp, H)
        bl=params["b_lin"].reshape(1, H).astype(jnp.float32),
    )


def preprocess_graph(params, emb_graph, matmul_dtype=jnp.float32):
    """Precompute the h-independent attention inputs ONCE per graph.

    proj_emb_graph = Conv1d(emb_graph) + bias does not depend on x/h, so it is
    hoisted out of the per-step kernel entirely (largest per-step matmul
    removed).  Kept in the Conv1d-native (B, H, L) layout.
    """
    B, H, L = emb_graph.shape
    pg = jnp.einsum('oc,bcl->bol',
                    params["w_conv"].astype(matmul_dtype),
                    emb_graph.astype(matmul_dtype),
                    preferred_element_type=jnp.float32)
    pg = (pg + params["b_conv"][None, :, None]).astype(jnp.float32)      # (B, H, L)
    v_b = jnp.broadcast_to(params["V"].reshape(1, 1, H),
                           (B, 1, H)).astype(jnp.float32)                # (B, 1, H)
    return dict(pg=pg, v_b=v_b)


# --------------------------------------------------------------------------
# Decoder forward (single fused pallas_call per step)
# --------------------------------------------------------------------------
@jax.jit
def decoder_forward(prep, attn, emb_cur_loc, last_hh):
    # emb_cur_loc: (B, 1, H);  last_hh = (h0, c0), each (1, B, H)
    B = emb_cur_loc.shape[0]
    H = prep["bl"].shape[1]
    Hp = prep["wl_T"].shape[0]
    mm_dtype = prep["wih_T"].dtype
    pg, v_b = attn["pg"], attn["v_b"]
    L = pg.shape[2]

    x = emb_cur_loc[:, 0, :].astype(mm_dtype)       # seq_len == 1
    h0 = last_hh[0][0].astype(mm_dtype)
    c0 = last_hh[1][0].astype(jnp.float32)
    c0p = jnp.pad(c0, ((0, 0), (0, Hp - H)))        # identity when Hp == H

    vmem = pl.BlockSpec(memory_space=pltpu.MemorySpace.VMEM)
    logits, h1p, c1p = pl.pallas_call(
        _decoder_step_kernel,
        out_shape=(jax.ShapeDtypeStruct((B, L), jnp.float32),
                   jax.ShapeDtypeStruct((B, Hp), jnp.float32),
                   jax.ShapeDtypeStruct((B, Hp), jnp.float32)),
        in_specs=[vmem] * 9,
        out_specs=(vmem, vmem, vmem),
        compiler_params=pltpu.CompilerParams(vmem_limit_bytes=32 * 1024 * 1024),
    )(x, h0, c0p, pg, v_b,
      prep["wih_T"], prep["whh_T"], prep["wl_T"], prep["bl"])

    h1 = h1p[:, :H]
    c1 = c1p[:, :H]
    return logits, (h1[None], c1[None])


# --------------------------------------------------------------------------
# Deterministic parameter init (shapes match the PyTorch module __init__)
# --------------------------------------------------------------------------
def init_params(key, hidden_size):
    H = hidden_size
    ks = jax.random.split(key, 7)
    s = 0.1
    return dict(
        w_ih=jax.random.normal(ks[0], (4 * H, H), jnp.float32) * s,  # LSTM weight_ih_l0
        w_hh=jax.random.normal(ks[1], (4 * H, H), jnp.float32) * s,  # LSTM weight_hh_l0
        w_conv=jax.random.normal(ks[2], (H, H), jnp.float32) * s,    # Conv1d (out,in,1) squeezed
        b_conv=jax.random.normal(ks[3], (H,), jnp.float32) * s,
        w_lin=jax.random.normal(ks[4], (H, H), jnp.float32) * s,     # Linear (out,in)
        b_lin=jax.random.normal(ks[5], (H,), jnp.float32) * s,
        V=jax.random.normal(ks[6], (H,), jnp.float32) * s,           # module inits V=0; random for a non-trivial test
    )


# --------------------------------------------------------------------------
# Pure-JAX reference (mirrors the PyTorch math) for verification
# --------------------------------------------------------------------------
def reference_forward(params, emb_cur_loc, last_hh, emb_graph):
    x = emb_cur_loc[:, 0, :]
    h0, c0 = last_hh[0][0], last_hh[1][0]
    gates = x @ params["w_ih"].T + h0 @ params["w_hh"].T
    i, f, g, o = jnp.split(gates, 4, axis=1)
    i, f, g, o = jax.nn.sigmoid(i), jax.nn.sigmoid(f), jnp.tanh(g), jax.nn.sigmoid(o)
    c1 = f * c0 + i * g
    h1 = o * jnp.tanh(c1)
    proj_graph = jnp.einsum("oc,bcl->bol", params["w_conv"], emb_graph) \
        + params["b_conv"][None, :, None]
    proj_hidden = h1 @ params["w_lin"].T + params["b_lin"]
    t = jnp.tanh(proj_graph + proj_hidden[:, :, None])
    logits = jnp.einsum("h,bhl->bl", params["V"], t)
    return logits, (h1[None], c1[None])


if __name__ == "__main__":
    # Full-precision f32 matmuls in the XLA reference / preprocessing so the
    # tight-tolerance comparison against the kernel is meaningful.
    jax.config.update("jax_default_matmul_precision", "highest")

    H, B, L = 32, 2, 8                      # hidden_size, batch, graph nodes
    key = jax.random.PRNGKey(0)
    kp, k1, k2, k3, k4 = jax.random.split(key, 5)
    params = init_params(kp, H)

    emb_cur_loc = jax.random.normal(k1, (B, 1, H), jnp.float32)
    h0 = jax.random.normal(k2, (1, B, H), jnp.float32)
    c0 = jax.random.normal(k3, (1, B, H), jnp.float32)
    emb_graph = jax.random.normal(k4, (B, H, L), jnp.float32)

    # One-time preprocessing (hoisted out of the autoregressive decode loop).
    prep = preprocess_params(params)                 # weight layouts, f32 matmul path
    attn = preprocess_graph(params, emb_graph)       # pg = proj_emb_graph, V broadcast

    # ---- single-step check (f32 matmul path) ----
    logits, (h1, c1) = decoder_forward(prep, attn, emb_cur_loc, (h0, c0))
    jax.block_until_ready((logits, h1, c1))
    ref_logits, (rh1, rc1) = reference_forward(params, emb_cur_loc, (h0, c0), emb_graph)
    assert logits.shape == (B, L) and h1.shape == (1, B, H) and c1.shape == (1, B, H)
    assert jnp.allclose(logits, ref_logits, atol=1e-4, rtol=1e-4)
    assert jnp.allclose(h1, rh1, atol=1e-4, rtol=1e-4)
    assert jnp.allclose(c1, rc1, atol=1e-4, rtol=1e-4)

    # ---- short decode loop: state threading, weights/pg preprocessing reused ----
    hh_k, hh_r = (h0, c0), (h0, c0)
    for _ in range(3):
        lg_k, hh_k = decoder_forward(prep, attn, emb_cur_loc, hh_k)
        lg_r, hh_r = reference_forward(params, emb_cur_loc, hh_r, emb_graph)
    jax.block_until_ready((lg_k, hh_k))
    assert jnp.allclose(lg_k, lg_r, atol=1e-4, rtol=1e-4)
    assert jnp.allclose(hh_k[0], hh_r[0], atol=1e-4, rtol=1e-4)
    assert jnp.allclose(hh_k[1], hh_r[1], atol=1e-4, rtol=1e-4)

    # ---- bf16 matmul-operand path (v6e/v7x MXU + halved weight DMA) ----
    prep_bf = preprocess_params(params, matmul_dtype=jnp.bfloat16)
    attn_bf = preprocess_graph(params, emb_graph, matmul_dtype=jnp.bfloat16)
    logits_bf, (h1_bf, c1_bf) = decoder_forward(prep_bf, attn_bf, emb_cur_loc, (h0, c0))
    jax.block_until_ready((logits_bf, h1_bf, c1_bf))
    assert jnp.allclose(logits_bf, ref_logits, atol=5e-2, rtol=5e-2)
    assert jnp.allclose(h1_bf, rh1, atol=5e-2, rtol=5e-2)
    assert jnp.allclose(c1_bf, rc1, atol=5e-2, rtol=5e-2)

    print("KERNEL_OK")
</pallas_src>

<mosaic_0001>
module attributes {stable_mosaic.version = 11 : i64} {
  func.func @_decoder_step_kernel(%arg0: memref<2x32xf32, #tpu.memory_space<vmem>>, %arg1: memref<2x32xf32, #tpu.memory_space<vmem>>, %arg2: memref<2x128xf32, #tpu.memory_space<vmem>>, %arg3: memref<2x32x8xf32, #tpu.memory_space<vmem>>, %arg4: memref<2x1x32xf32, #tpu.memory_space<vmem>>, %arg5: memref<32x512xf32, #tpu.memory_space<vmem>>, %arg6: memref<32x512xf32, #tpu.memory_space<vmem>>, %arg7: memref<128x32xf32, #tpu.memory_space<vmem>>, %arg8: memref<1x32xf32, #tpu.memory_space<vmem>>, %arg9: memref<2x8xf32, #tpu.memory_space<vmem>>, %arg10: memref<2x128xf32, #tpu.memory_space<vmem>>, %arg11: memref<2x128xf32, #tpu.memory_space<vmem>>) attributes {dimension_semantics = [], scalar_prefetch = 0 : i64, scratch_operands = 0 : i64, tpu.core_type = #tpu.core_type<tc>} {
    %c0 = arith.constant 0 : index
    %c0_0 = arith.constant 0 : index
    %0 = vector.load %arg0[%c0, %c0_0] : memref<2x32xf32, #tpu.memory_space<vmem>>, vector<2x32xf32>
    %c0_1 = arith.constant 0 : index
    %c0_2 = arith.constant 0 : index
    %1 = vector.load %arg5[%c0_1, %c0_2] : memref<32x512xf32, #tpu.memory_space<vmem>>, vector<32x512xf32>
    %cst = arith.constant dense<0.000000e+00> : vector<2x512xf32>
    %2 = tpu.matmul %0, %1, %cst {dimension_numbers = #tpu.dot_dimension_numbers<[1], [0], [0], [1], [0, 0, 1, 1], [], []>, precision = #tpu.contract_precision<fp32>} : vector<2x32xf32>, vector<32x512xf32>, vector<2x512xf32> -> vector<2x512xf32>
    %c0_3 = arith.constant 0 : index
    %c0_4 = arith.constant 0 : index
    %3 = vector.load %arg1[%c0_3, %c0_4] : memref<2x32xf32, #tpu.memory_space<vmem>>, vector<2x32xf32>
    %c0_5 = arith.constant 0 : index
    %c0_6 = arith.constant 0 : index
    %4 = vector.load %arg6[%c0_5, %c0_6] : memref<32x512xf32, #tpu.memory_space<vmem>>, vector<32x512xf32>
    %cst_7 = arith.constant dense<0.000000e+00> : vector<2x512xf32>
    %5 = tpu.matmul %3, %4, %cst_7 {dimension_numbers = #tpu.dot_dimension_numbers<[1], [0], [0], [1], [0, 0, 1, 1], [], []>, precision = #tpu.contract_precision<fp32>} : vector<2x32xf32>, vector<32x512xf32>, vector<2x512xf32> -> vector<2x512xf32>
    %6 = arith.addf %2, %5 : vector<2x512xf32>
    %7 = vector.extract_strided_slice %6 {offsets = [0, 0], sizes = [2, 128], strides = [1, 1]} : vector<2x512xf32> to vector<2x128xf32>
    %8 = arith.negf %7 : vector<2x128xf32>
    %9 = math.exp %8 : vector<2x128xf32>
    %cst_8 = arith.constant 1.000000e+00 : f32
    %10 = vector.broadcast %cst_8 : f32 to vector<2x128xf32>
    %11 = arith.addf %10, %9 : vector<2x128xf32>
    %12 = arith.divf %10, %11 : vector<2x128xf32>
    %13 = vector.extract_strided_slice %6 {offsets = [0, 128], sizes = [2, 128], strides = [1, 1]} : vector<2x512xf32> to vector<2x128xf32>
    %14 = arith.negf %13 : vector<2x128xf32>
    %15 = math.exp %14 : vector<2x128xf32>
    %cst_9 = arith.constant 1.000000e+00 : f32
    %16 = vector.broadcast %cst_9 : f32 to vector<2x128xf32>
    %17 = arith.addf %16, %15 : vector<2x128xf32>
    %18 = arith.divf %16, %17 : vector<2x128xf32>
    %19 = vector.extract_strided_slice %6 {offsets = [0, 256], sizes = [2, 128], strides = [1, 1]} : vector<2x512xf32> to vector<2x128xf32>
    %20 = math.tanh %19 : vector<2x128xf32>
    %21 = vector.extract_strided_slice %6 {offsets = [0, 384], sizes = [2, 128], strides = [1, 1]} : vector<2x512xf32> to vector<2x128xf32>
    %22 = arith.negf %21 : vector<2x128xf32>
    %23 = math.exp %22 : vector<2x128xf32>
    %cst_10 = arith.constant 1.000000e+00 : f32
    %24 = vector.broadcast %cst_10 : f32 to vector<2x128xf32>
    %25 = arith.addf %24, %23 : vector<2x128xf32>
    %26 = arith.divf %24, %25 : vector<2x128xf32>
    %c0_11 = arith.constant 0 : index
    %c0_12 = arith.constant 0 : index
    %27 = vector.load %arg2[%c0_11, %c0_12] : memref<2x128xf32, #tpu.memory_space<vmem>>, vector<2x128xf32>
    %28 = arith.mulf %18, %27 : vector<2x128xf32>
    %29 = arith.mulf %12, %20 : vector<2x128xf32>
    %30 = arith.addf %28, %29 : vector<2x128xf32>
    %31 = math.tanh %30 : vector<2x128xf32>
    %32 = arith.mulf %26, %31 : vector<2x128xf32>
    %c0_13 = arith.constant 0 : index
    %c0_14 = arith.constant 0 : index
    %33 = vector.load %arg11[%c0_13, %c0_14] : memref<2x128xf32, #tpu.memory_space<vmem>>, vector<2x128xf32>
    tpu.vector_store %arg11[%c0_13, %c0_14], %30 {strides = array<i32>} : memref<2x128xf32, #tpu.memory_space<vmem>>, vector<2x128xf32>,
    %c0_15 = arith.constant 0 : index
    %c0_16 = arith.constant 0 : index
    %34 = vector.load %arg10[%c0_15, %c0_16] : memref<2x128xf32, #tpu.memory_space<vmem>>, vector<2x128xf32>
    tpu.vector_store %arg10[%c0_15, %c0_16], %32 {strides = array<i32>} : memref<2x128xf32, #tpu.memory_space<vmem>>, vector<2x128xf32>,
    %c0_17 = arith.constant 0 : index
    %c0_18 = arith.constant 0 : index
    %35 = vector.load %arg7[%c0_17, %c0_18] : memref<128x32xf32, #tpu.memory_space<vmem>>, vector<128x32xf32>
    %cst_19 = arith.constant dense<0.000000e+00> : vector<2x32xf32>
    %36 = tpu.matmul %32, %35, %cst_19 {dimension_numbers = #tpu.dot_dimension_numbers<[1], [0], [0], [1], [0, 0, 1, 1], [], []>, precision = #tpu.contract_precision<fp32>} : vector<2x128xf32>, vector<128x32xf32>, vector<2x32xf32> -> vector<2x32xf32>
    %c0_20 = arith.constant 0 : index
    %c0_21 = arith.constant 0 : index
    %37 = vector.load %arg8[%c0_20, %c0_21] : memref<1x32xf32, #tpu.memory_space<vmem>>, vector<1x32xf32>
    %38 = vector.broadcast %37 : vector<1x32xf32> to vector<2x32xf32>
    %39 = arith.addf %36, %38 : vector<2x32xf32>
    %c0_22 = arith.constant 0 : index
    %c0_23 = arith.constant 0 : index
    %c0_24 = arith.constant 0 : index
    %40 = vector.load %arg3[%c0_22, %c0_23, %c0_24] : memref<2x32x8xf32, #tpu.memory_space<vmem>>, vector<2x32x8xf32>
    %41 = vector.shape_cast %39 : vector<2x32xf32> to vector<2x32x1xf32>
    %42 = vector.broadcast %41 : vector<2x32x1xf32> to vector<2x32x8xf32>
    %43 = arith.addf %40, %42 : vector<2x32x8xf32>
    %44 = math.tanh %43 : vector<2x32x8xf32>
    %c0_25 = arith.constant 0 : index
    %c0_26 = arith.constant 0 : index
    %c0_27 = arith.constant 0 : index
    %45 = vector.load %arg4[%c0_25, %c0_26, %c0_27] : memref<2x1x32xf32, #tpu.memory_space<vmem>>, vector<2x1x32xf32>
    "tpu.trace_start"() <{level = 10 : i32, message = "boh,bhl->bol"}> : () -> ()
    %cst_28 = arith.constant dense<0.000000e+00> : vector<2x1x8xf32>
    %46 = tpu.matmul %45, %44, %cst_28 {dimension_numbers = #tpu.dot_dimension_numbers<[2], [1], [1], [2], [0, 0, 0, 1, 1, 2], [0], [0]>, precision = #tpu.contract_precision<fp32>} : vector<2x1x32xf32>, vector<2x32x8xf32>, vector<2x1x8xf32> -> vector<2x1x8xf32>
    "tpu.trace_stop"() : () -> ()
    %47 = vector.shape_cast %46 : vector<2x1x8xf32> to vector<2x8xf32>
    %c0_29 = arith.constant 0 : index
    %c0_30 = arith.constant 0 : index
    %48 = vector.load %arg9[%c0_29, %c0_30] : memref<2x8xf32, #tpu.memory_space<vmem>>, vector<2x8xf32>
    tpu.vector_store %arg9[%c0_29, %c0_30], %47 {strides = array<i32>} : memref<2x8xf32, #tpu.memory_space<vmem>>, vector<2x8xf32>,
    return
  }
}

</mosaic_0001>

<bundles_post_ra>
// kernel: decoder_forward.1
= control target key start
LH: loop header
LB: loop body
LE: loop exit
PB: predicated region body
PF: predicated region fallthrough
CT: control target
= control target key end

     0   :  { %17 = vsyncpa [#allocation3], 0  ;;  %s6245_s0 = inlined_call_operand.vmem [shape: f32[2,32], index: 0, kind: input, shape index: {}]   ;;  %s6246_s1 = inlined_call_operand.vmem [shape: f32[2,32], index: 1, kind: input, shape index: {}]   ;;  %s6247_s2 = inlined_call_operand.vmem [shape: f32[2,128], index: 2, kind: input, shape index: {}]   ;;  %s6248_s3 = inlined_call_operand.vmem [shape: f32[2,32,8], index: 3, kind: input, shape index: {}]   ;;  %s6249_s4 = inlined_call_operand.vmem [shape: f32[2,1,32], index: 4, kind: input, shape index: {}]   ;;  %s6250_s5 = inlined_call_operand.vmem [shape: f32[32,512], index: 5, kind: input, shape index: {}]   ;;  %s6251_s6 = inlined_call_operand.vmem [shape: f32[32,512], index: 6, kind: input, shape index: {}]   ;;  %s6252_s7 = inlined_call_operand.vmem [shape: f32[128,32], index: 7, kind: input, shape index: {}]   ;;  %s6253_s8 = inlined_call_operand.hbm [shape: f32[1,32], index: 8, kind: input, shape index: {}]   ;;  %s6254_s9 = inlined_call_operand.hbm [shape: f32[2,8], index: 9, kind: output, shape index: {0}]   ;;  %s6255_s10 = inlined_call_operand.vmem [shape: f32[2,128], index: 10, kind: output, shape index: {1}]   ;;  %s6256_s11 = inlined_call_operand.vmem [shape: f32[2,128], index: 11, kind: output, shape index: {2}]  }
   0x1   :  { %18 = vsyncpa [#allocation4], 0  ;;  %s5098_s17 = smov [#allocation2]   ;;  %s5050_s21 = scalar_lea.hbm %s6253_s8, 16 }
   0x2   :  { %s41_s18 = sshll.u32 %s5098_s17, 4  ;;  %p5051_p0 = scmp.ne.s32.totalorder %s6253_s8, %s5050_s21  ;;  %s42_s18 = int_to_ptr.vmem [resolvable:$true] %s41_s18 }
   0x3   :  { %p5054_p1 = scmp.lt.u32.totalorder %s5050_s21, %s6253_s8 }
   0x5   :  { %p5056_p2 = pnand %p5054_p1, %p5051_p0 }
   0x7   :  { %5059 = shalt.err (!%p5056_p2)
}
   0x8   :  { %s5060_s26 = scalar_lea.vmem %s42_s18, 16  ;;  %s5064_s27 = scalar_lea.vmem %s42_s18, 32 }
   0x9   :  { %p5061_p3 = scmp.ne.s32.totalorder %s42_s18, %s5060_s26  ;;  %p5065_p4 = scmp.lt.s32.totalorder %s42_s18, %s42_s18 }
   0xa   :  { %p5066_p5 = scmp.lt.s32.totalorder %s5064_s27, %s5060_s26 }
   0xc   :  { %p5067_p6 = por %p5066_p5, %p5065_p4 }
   0xe   :  { %p5068_p7 = pnand %p5067_p6, %p5061_p3 }
  0x10   :  { %5071 = shalt.err (!%p5068_p7)
}
  0x11   :  { %44 = dma.hbm_to_vmem [thread:$0]  %s6253_s8, 16, %s42_s18, [#allocation3]  }
  0x12   :  { %5094 = dma.done.wait [#allocation3], 16  }
  0x13   :  { %5095 = vsyncadd [#allocation3], 4294967280  ;;  %v5099_v0 = vmov 0.0   ;;  %v67_v1 = vld [vmem:[%s6251_s6 + $0x8] sm:$0xff]  ;;  %v66_v3 = vld [vmem:[%s6251_s6] sm:$0xff]  ;;  %vm82_vm0 = vcmask 261120  }
  0x14   :  { %158 = vmatprep.mubr.f32.mxu1 %v5099_v0  ;;  %362 = vmatprep.mubr.f32.mxu0 %v5099_v0  ;;  %v71_v2 = vld [vmem:[%s6251_s6 + $0x28] sm:$0xff]  ;;  %v86_v4 = vand.u32 4294901760, %v67_v1  ;;  %v70_v6 = vld [vmem:[%s6251_s6 + $0x20] sm:$0xff]  ;;  %v88_v7 = vand.u32 4294901760, %v66_v3  ;;  %v69_v48 = vld [vmem:[%s6251_s6 + $0x18] sm:$0xff]  ;;  %vm5101_vm1 = vmmov 0  }
  0x15   :  { %v90_v5 = vand.u32 4294901760, %v71_v2  ;;  %v75_v8 = vld [vmem:[%s6251_s6 + $0x48] sm:$0xff]  ;;  %v92_v10 = vand.u32 4294901760, %v70_v6  ;;  %v74_v13 = vld [vmem:[%s6251_s6 + $0x40] sm:$0xff]  ;;  %v73_v57 = vld [vmem:[%s6251_s6 + $0x38] sm:$0xff]  ;;  %v629_v62 = vand.u32 4294901760, %v69_v48 }
  0x16   :  { %v79_v9 = vld [vmem:[%s6251_s6 + $0x68] sm:$0xff]  ;;  %v94_v11 = vand.u32 4294901760, %v75_v8  ;;  %v5200_v15 = vsub.f32 %v67_v1, %v86_v4  ;;  %v5204_v17 = vsub.f32 %v66_v3, %v88_v7  ;;  %v78_v18 = vld [vmem:[%s6251_s6 + $0x60] sm:$0xff]  ;;  %v96_v27 = vand.u32 4294901760, %v74_v13  ;;  %v68_v58 = vld [vmem:[%s6251_s6 + $0x10] sm:$0xff] }
  0x17   :  { %v98_v12 = vand.u32 4294901760, %v79_v9  ;;  %v5198_v14 = vpack.c.bf16 %v90_v5, %v86_v4  ;;  %v5202_v16 = vsub.f32 %v71_v2, %v90_v5  ;;  %v65_v19 = vld [vmem:[%s6246_s1] sm:$0x3]  ;;  %v5212_v20 = vpack.c.bf16 %v92_v10, %v88_v7  ;;  %v72_v63 = vld [vmem:[%s6251_s6 + $0x30] sm:$0xff]  ;;  %v77_v5 = vld [vmem:[%s6251_s6 + $0x58] sm:$0xff] }
  0x18   :  { %v5214_v21 = vsub.f32 %v70_v6, %v92_v10  ;;  %v5218_v23 = vsub.f32 %v75_v8, %v94_v11  ;;  %v178_v25 = vand.u32 4294901760, %v5204_v17  ;;  %v100_v30 = vand.u32 4294901760, %v78_v18  ;;  %v81_v10 = vld [vmem:[%s6251_s6 + $0x78] sm:$0xff] }
  0x19   :  { %v5216_v22 = vpack.c.bf16 %v98_v12, %v94_v11  ;;  %4532 = vmatprep.subr.bf16.mxu1 %v5198_v14  ;;  %v4547_v24 = vpack.c.bf16 %v5202_v16, %v5200_v15  ;;  %v5224_v26 = vsub.f32 %v79_v9, %v98_v12  ;;  %v84_v31 = vsel %vm82_vm0, %v65_v19, 0  ;;  %v76_v19 = vld [vmem:[%s6251_s6 + $0x50] sm:$0xff] }
  0x1a   :  { %4534 = vmatpush1.bf16.msra.mxu1 %v5212_v20  ;;  %v190_v28 = vand.u32 4294901760, %v5214_v21  ;;  %v4549_v29 = vpack.c.bf16 %v5214_v21, %v5204_v17  ;;  %v5232_v32 = vsub.f32 %v74_v13, %v96_v27  ;;  %v5236_v34 = vand.u32 4294901760, %v84_v31 }
  0x1b   :  { %4548 = vmatprep.subr.bf16.mxu0 %v4547_v24  ;;  %4536 = vmatprep.subr.bf16.mxu1 %v5216_v22  ;;  %v4551_v33 = vpack.c.bf16 %v5224_v26, %v5218_v23  ;;  %v172_v35 = vand.u32 4294901760, %v5200_v15  ;;  %v5239_v36 = vpack.c.bf16 %v100_v30, %v96_v27  ;;  %v5241_v37 = vsub.f32 %v78_v18, %v100_v30  ;;  %v80_v30 = vld [vmem:[%s6251_s6 + $0x70] sm:$0xff] }
  0x1c   :  { %4550 = vmatpush1.bf16.msra.mxu0 %v4549_v29  ;;  %v184_v38 = vand.u32 4294901760, %v5202_v16  ;;  %v179_v39 = vsub.f32 %v5204_v17, %v178_v25  ;;  %v5248_v40 = vsub.f32 %v84_v31, %v5236_v34  ;;  %v191_v42 = vsub.f32 %v5214_v21, %v190_v28 }
  0x1d   :  { %4552 = vmatprep.subr.bf16.mxu0 %v4551_v33  ;;  %v173_v41 = vsub.f32 %v5200_v15, %v172_v35  ;;  %v196_v43 = vand.u32 4294901760, %v5218_v23  ;;  %v4553_v44 = vpack.c.bf16 %v5241_v37, %v5232_v32  ;;  %v208_v47 = vand.u32 4294901760, %v5224_v26 }
  0x1e   :  { %4538 = vmatpush1.bf16.msra.mxu1 %v5239_v36  ;;  %v185_v45 = vsub.f32 %v5202_v16, %v184_v38  ;;  %v180_v46 = vand.u32 4294901760, %v179_v39  ;;  %v5268_v49 = vand.u32 4294901760, %v5248_v40  ;;  %v192_v51 = vand.u32 4294901760, %v191_v42 }
  0x1f   :  { %v174_v50 = vand.u32 4294901760, %v173_v41  ;;  %v197_v52 = vsub.f32 %v5218_v23, %v196_v43  ;;  %v209_v54 = vsub.f32 %v5224_v26, %v208_v47  ;;  %v202_v55 = vand.u32 4294901760, %v5232_v32 }
  0x20   :  { %4554 = vmatpush1.bf16.msra.mxu0 %v4553_v44  ;;  %v186_v53 = vand.u32 4294901760, %v185_v45  ;;  %v214_v56 = vand.u32 4294901760, %v5241_v37  ;;  %v162_v59 = vsub.f32 %v5248_v40, %v5268_v49  ;;  %v4541_v60 = vpack.c.bf16 %v192_v51, %v180_v46 }
  0x21   :  { %4556 = vmatprep.subr.bf16.mxu0 %v5198_v14  ;;  %v198_v61 = vand.u32 4294901760, %v197_v52  ;;  %v210_v2 = vand.u32 4294901760, %v209_v54  ;;  %v203_v3 = vsub.f32 %v5232_v32, %v202_v55  ;;  %v633_v7 = vand.u32 4294901760, %v73_v57 }
  0x22   :  { %v4539_v1 = vpack.c.bf16 %v186_v53, %v174_v50  ;;  %v215_v4 = vsub.f32 %v5241_v37, %v214_v56  ;;  %v5293_v6 = vand.u32 4294901760, %v162_v59  ;;  %v5296_v8 = vsub.f32 %v69_v48, %v629_v62 }
  0x23   :  { %365 = vmatmul.mubr.f32.vlgmr.msra.gmra.mrb[0].mxu0 %v5248_v40  ;;  %v631_v9 = vand.u32 4294901760, %v68_v58  ;;  %v4543_v11 = vpack.c.bf16 %v210_v2, %v198_v61  ;;  %v204_v12 = vand.u32 4294901760, %v203_v3  ;;  %v635_v18 = vand.u32 4294901760, %v72_v63  ;;  %v54_v2 = vld [vmem:[%s6250_s5 + $0x28] sm:$0xff]  ;;  %v49_v3 = vld [vmem:[%s6250_s5] sm:$0xff] }
  0x24   :  { %4540 = vmatprep.subr.bf16.mxu1 %v4539_v1  ;;  %4558 = vmatpush1.bf16.msra.mxu0 %v5212_v20  ;;  %v216_v13 = vand.u32 4294901760, %v215_v4  ;;  %v5307_v24 = vpack.c.bf16 %v633_v7, %v629_v62  ;;  %v5309_v26 = vsub.f32 %v73_v57, %v633_v7  ;;  %v637_v29 = vand.u32 4294901760, %v77_v5  ;;  %v50_v1 = vld [vmem:[%s6250_s5 + $0x8] sm:$0xff] }
  0x25   :  { %164 = vmatmul.mubr.f32.vlgmr.msra.gmra.mrb[0].mxu1 %v5293_v6  ;;  %4560 = vmatprep.subr.bf16.mxu0 %v5216_v22  ;;  %v5311_v27 = vsub.f32 %v68_v58, %v631_v9  ;;  %v5317_v32 = vpack.c.bf16 %v635_v18, %v631_v9  ;;  %v5319_v33 = vsub.f32 %v72_v63, %v635_v18  ;;  %v641_v37 = vand.u32 4294901760, %v81_v10  ;;  %v53_v9 = vld [vmem:[%s6250_s5 + $0x20] sm:$0xff]  ;;  %v58_v18 = vld [vmem:[%s6250_s5 + $0x48] sm:$0xff] }
  0x26   :  { %4542 = vmatpush1.bf16.msra.mxu1 %v4541_v60  ;;  %v4545_v31 = vpack.c.bf16 %v216_v13, %v204_v12  ;;  %274 = vmatprep.mubr.f32.mxu1 %v5099_v0  ;;  %v4563_v39 = vpack.c.bf16 %v184_v38, %v172_v35  ;;  %v4565_v41 = vpack.c.bf16 %v190_v28, %v178_v25  ;;  %v639_v44 = vand.u32 4294901760, %v76_v19 }
  0x27   :  { %4544 = vmatprep.subr.bf16.mxu1 %v4543_v11  ;;  %443 = vmatprep.mubr.f32.mxu0 %v5099_v0  ;;  %v5330_v42 = vsub.f32 %v77_v5, %v637_v29  ;;  %v5333_v45 = vpack.c.bf16 %v641_v37, %v637_v29  ;;  %v5335_v46 = vsub.f32 %v81_v10, %v641_v37  ;;  %v643_v48 = vand.u32 4294901760, %v80_v30  ;;  %v62_v37 = vld [vmem:[%s6250_s5 + $0x68] sm:$0xff] }
  0x28   :  { %4562 = vmatpush1.bf16.msra.mxu0 %v5239_v36  ;;  %v4567_v15 = vpack.c.bf16 %v208_v47, %v196_v43  ;;  %v5339_v16 = vsub.f32 %v76_v19, %v639_v44  ;;  %v4569_v17 = vpack.c.bf16 %v214_v56, %v202_v55  ;;  %v715_v21 = vand.u32 4294901760, %v5296_v8 }
  0x29   :  { %4564 = vmatprep.subr.bf16.mxu0 %v4563_v39  ;;  %v727_v25 = vand.u32 4294901760, %v5309_v26  ;;  %v5343_v28 = vpack.c.bf16 %v643_v48, %v639_v44  ;;  %v5345_v35 = vsub.f32 %v80_v30, %v643_v48  ;;  %v721_v38 = vand.u32 4294901760, %v5311_v27 }
  0x2a   :  { %4546 = vmatpush1.bf16.msra.mxu1 %v4545_v31  ;;  %v733_v50 = vand.u32 4294901760, %v5319_v33  ;;  %v716_v23 = vsub.f32 %v5296_v8, %v715_v21  ;;  %v739_v47 = vand.u32 4294901760, %v5330_v42  ;;  %v751_v51 = vand.u32 4294901760, %v5335_v46 }
  0x2b   :  { %4580 = vmatprep.subr.bf16.mxu1 %v5307_v24  ;;  %447 = vmatmul.mubr.f32.vlgmr.msra.gmra.mrb[0].mxu0 %v5268_v49  ;;  %v728_v43 = vsub.f32 %v5309_v26, %v727_v25  ;;  %v722_v52 = vsub.f32 %v5311_v27, %v721_v38  ;;  %v745_v54 = vand.u32 4294901760, %v5339_v16  ;;  %v757_v55 = vand.u32 4294901760, %v5345_v35 }
  0x2c   :  { %4566 = vmatpush1.bf16.msra.mxu0 %v4565_v41  ;;  %541 = vmatprep.mubr.f32.mxu0 %v5099_v0  ;;  %v734_v53 = vsub.f32 %v5319_v33, %v733_v50  ;;  %v717_v56 = vand.u32 4294901760, %v716_v23  ;;  %v740_v58 = vsub.f32 %v5330_v42, %v739_v47  ;;  %v752_v59 = vsub.f32 %v5335_v46, %v751_v51 }
  0x2d   :  { %276 = vmatmul.mubr.f32.vlgmr.msra.gmra.mrb[0].mxu1 %v5236_v34  ;;  %4568 = vmatprep.subr.bf16.mxu0 %v4567_v15  ;;  %v729_v57 = vand.u32 4294901760, %v728_v43  ;;  %v723_v60 = vand.u32 4294901760, %v722_v52  ;;  %v746_v62 = vsub.f32 %v5339_v16, %v745_v54  ;;  %v758_v63 = vsub.f32 %v5345_v35, %v757_v55  ;;  %v61_v15 = vld [vmem:[%s6250_s5 + $0x60] sm:$0xff] }
  0x2e   :  { %4582 = vmatpush1.bf16.msra.mxu1 %v5317_v32  ;;  %701 = vmatprep.mubr.f32.mxu1 %v5099_v0  ;;  %v735_v61 = vand.u32 4294901760, %v734_v53  ;;  %v741_v5 = vand.u32 4294901760, %v740_v58  ;;  %v753_v7 = vand.u32 4294901760, %v752_v59  ;;  %v4595_v13 = vpack.c.bf16 %v5309_v26, %v5296_v8 }
  0x2f   :  { %4584 = vmatprep.subr.bf16.mxu1 %v5333_v45  ;;  %v4587_v4 = vpack.c.bf16 %v729_v57, %v717_v56  ;;  %v747_v11 = vand.u32 4294901760, %v746_v62  ;;  %v759_v12 = vand.u32 4294901760, %v758_v63  ;;  %v4597_v19 = vpack.c.bf16 %v5319_v33, %v5311_v27  ;;  %v55_v27 = vld [vmem:[%s6250_s5 + $0x30] sm:$0xff] }
  0x30   :  { %4570 = vmatpush1.bf16.msra.mxu0 %v4569_v17  ;;  %v4589_v10 = vpack.c.bf16 %v735_v61, %v723_v60  ;;  %v1175_v29 = vand.u32 4294901760, %v50_v1  ;;  %v1179_v30 = vand.u32 4294901760, %v54_v2  ;;  %v1177_v31 = vand.u32 4294901760, %v49_v3  ;;  %v48_v17 = vld [vmem:[%s6245_s0] sm:$0x3] }
  0x31   :  { %4572 = vmatprep.subr.bf16.mxu0 %v5198_v14  ;;  %v4591_v39 = vpack.c.bf16 %v753_v7, %v741_v5  ;;  %v4593_v41 = vpack.c.bf16 %v759_v12, %v747_v11  ;;  %v1181_v44 = vand.u32 4294901760, %v53_v9  ;;  %v4599_v48 = vpack.c.bf16 %v5335_v46, %v5330_v42  ;;  %v57_v14 = vld [vmem:[%s6250_s5 + $0x40] sm:$0xff]  ;;  %v60_v42 = vld [vmem:[%s6250_s5 + $0x58] sm:$0xff] }
  0x32   :  { %4586 = vmatpush1.bf16.msra.mxu1 %v5343_v28  ;;  %v5420_v23 = vpack.c.bf16 %v1179_v30, %v1175_v29  ;;  %v5422_v43 = vsub.f32 %v50_v1, %v1175_v29  ;;  %v5424_v52 = vsub.f32 %v54_v2, %v1179_v30  ;;  %v1183_v53 = vand.u32 4294901760, %v58_v18  ;;  %v64_v46 = vld [vmem:[%s6250_s5 + $0x78] sm:$0xff] }
  0x33   :  { %4588 = vmatprep.subr.bf16.mxu1 %v4587_v4  ;;  %543 = vmatmul.mubr.f32.vlgmr.msra.gmra.mrb[0].mxu0 %v5236_v34  ;;  %v5428_v56 = vpack.c.bf16 %v1181_v44, %v1177_v31  ;;  %v5430_v57 = vsub.f32 %v49_v3, %v1177_v31  ;;  %v5432_v58 = vsub.f32 %v53_v9, %v1181_v44  ;;  %v1187_v59 = vand.u32 4294901760, %v62_v37 }
  0x34   :  { %4574 = vmatpush1.bf16.msra.mxu0 %v5212_v20  ;;  %621 = vmatprep.mubr.f32.mxu0 %v5099_v0  ;;  %v5436_v60 = vsub.f32 %v58_v18, %v1183_v53  ;;  %v1185_v61 = vand.u32 4294901760, %v57_v14  ;;  %v1189_v62 = vand.u32 4294901760, %v61_v15  ;;  %v1173_v63 = vsel %vm82_vm0, %v48_v17, 0 }
  0x35   :  { %707 = vmatmul.mubr.f32.vlgmr.msra.gmra.mrb[2].mxu1 %v5293_v6  ;;  %4576 = vmatprep.subr.bf16.mxu0 %v5216_v22  ;;  %v5440_v20 = vpack.c.bf16 %v1187_v59, %v1183_v53  ;;  %v5442_v1 = vsub.f32 %v62_v37, %v1187_v59  ;;  %v5444_v2 = vand.u32 4294901760, %v1173_v63  ;;  %v1261_v3 = vand.u32 4294901760, %v5422_v43 }
  0x36   :  { %4590 = vmatpush1.bf16.msra.mxu1 %v4589_v10  ;;  %817 = vmatprep.mubr.f32.mxu1 %v5099_v0  ;;  %v5447_v6 = vpack.c.bf16 %v1189_v62, %v1185_v61  ;;  %v5449_v22 = vsub.f32 %v57_v14, %v1185_v61  ;;  %v5451_v4 = vsub.f32 %v61_v15, %v1189_v62  ;;  %v1273_v5 = vand.u32 4294901760, %v5424_v52 }
  0x37   :  { %4592 = vmatprep.subr.bf16.mxu1 %v4591_v39  ;;  %v5456_v7 = vsub.f32 %v1173_v63, %v5444_v2  ;;  %v1262_v9 = vsub.f32 %v5422_v43, %v1261_v3  ;;  %v1267_v10 = vand.u32 4294901760, %v5430_v57  ;;  %v1279_v11 = vand.u32 4294901760, %v5432_v58 }
  0x38   :  { %4578 = vmatpush1.bf16.msra.mxu0 %v5239_v36  ;;  %v1274_v12 = vsub.f32 %v5424_v52, %v1273_v5  ;;  %v1285_v18 = vand.u32 4294901760, %v5436_v60  ;;  %v1297_v36 = vand.u32 4294901760, %v5442_v1  ;;  %v1291_v29 = vand.u32 4294901760, %v5449_v22 }
  0x39   :  { %4628 = vmatprep.subr.bf16.mxu0 %v5420_v23  ;;  %v5471_v30 = vand.u32 4294901760, %v5456_v7  ;;  %v1263_v31 = vand.u32 4294901760, %v1262_v9  ;;  %v1268_v37 = vsub.f32 %v5430_v57, %v1267_v10  ;;  %v1280_v39 = vsub.f32 %v5432_v58, %v1279_v11 }
  0x3a   :  { %4594 = vmatpush1.bf16.msra.mxu1 %v4593_v41  ;;  %v1275_v44 = vand.u32 4294901760, %v1274_v12  ;;  %v1286_v41 = vsub.f32 %v5436_v60, %v1285_v18  ;;  %v1298_v14 = vsub.f32 %v5442_v1, %v1297_v36  ;;  %v1292_v15 = vsub.f32 %v5449_v22, %v1291_v29 }
  0x3b   :  { %4596 = vmatprep.subr.bf16.mxu1 %v4595_v13  ;;  %623 = vmatmul.mubr.f32.vlgmr.msra.gmra.mrb[0].mxu0 %v5236_v34  ;;  %v1251_v13 = vsub.f32 %v5456_v7, %v5471_v30  ;;  %v1269_v17 = vand.u32 4294901760, %v1268_v37  ;;  %v1281_v53 = vand.u32 4294901760, %v1280_v39  ;;  %v1303_v59 = vand.u32 4294901760, %v5451_v4 }
  0x3c   :  { %4630 = vmatpush1.bf16.msra.mxu0 %v5428_v56  ;;  %1247 = vmatprep.mubr.f32.mxu0 %v5099_v0  ;;  %v4635_v61 = vpack.c.bf16 %v1275_v44, %v1263_v31  ;;  %v1287_v62 = vand.u32 4294901760, %v1286_v41  ;;  %v1299_v63 = vand.u32 4294901760, %v1298_v14  ;;  %v4601_v9 = vpack.c.bf16 %v5345_v35, %v5339_v16  ;;  %v63_v16 = vld [vmem:[%s6250_s5 + $0x70] sm:$0xff] }
  0x3d   :  { %819 = vmatmul.mubr.f32.vlgmr.msra.gmra.mrb[2].mxu1 %v5236_v34  ;;  %4632 = vmatprep.subr.bf16.mxu0 %v5440_v20  ;;  %v1304_v12 = vsub.f32 %v5451_v4, %v1303_v59  ;;  %v5508_v31 = vand.u32 4294901760, %v1251_v13  ;;  %v4637_v37 = vpack.c.bf16 %v1281_v53, %v1269_v17  ;;  %v1293_v39 = vand.u32 4294901760, %v1292_v15  ;;  %v56_v13 = vld [vmem:[%s6250_s5 + $0x38] sm:$0xff]  ;;  %v51_v53 = vld [vmem:[%s6250_s5 + $0x10] sm:$0xff] }
  0x3e   :  { %4598 = vmatpush1.bf16.msra.mxu1 %v4597_v19  ;;  %905 = vmatprep.mubr.f32.mxu1 %v5099_v0  ;;  %v4639_v44 = vpack.c.bf16 %v1299_v63, %v1287_v62  ;;  %v4611_v14 = vpack.c.bf16 %v727_v25, %v715_v21  ;;  %v4645_v15 = vpack.c.bf16 %v5432_v58, %v5430_v57  ;;  %v1722_v25 = vand.u32 4294901760, %v56_v13 }
  0x3f   :  { %4600 = vmatprep.subr.bf16.mxu1 %v4599_v48  ;;  %v1305_v19 = vand.u32 4294901760, %v1304_v12  ;;  %v4643_v48 = vpack.c.bf16 %v5424_v52, %v5422_v43  ;;  %v4647_v17 = vpack.c.bf16 %v5442_v1, %v5436_v60  ;;  %v4613_v8 = vpack.c.bf16 %v733_v50, %v721_v38 }
  0x40   :  { %4634 = vmatpush1.bf16.msra.mxu0 %v5447_v6  ;;  %v4615_v26 = vpack.c.bf16 %v751_v51, %v739_v47  ;;  %v4649_v33 = vpack.c.bf16 %v5451_v4, %v5449_v22  ;;  %v4617_v38 = vpack.c.bf16 %v757_v55, %v745_v54  ;;  %v1720_v50 = vand.u32 4294901760, %v51_v53 }
  0x41   :  { %4636 = vmatprep.subr.bf16.mxu0 %v4635_v61  ;;  %v4641_v41 = vpack.c.bf16 %v1305_v19, %v1293_v39  ;;  %v1724_v47 = vand.u32 4294901760, %v55_v27  ;;  %v5567_v61 = vsub.f32 %v56_v13, %v1722_v25  ;;  %v1726_v62 = vand.u32 4294901760, %v60_v42 }
  0x42   :  { %4602 = vmatpush1.bf16.msra.mxu1 %v4601_v9  ;;  %v1730_v63 = vand.u32 4294901760, %v64_v46  ;;  %v5576_v35 = vsub.f32 %v51_v53, %v1720_v50  ;;  %v1732_v9 = vand.u32 4294901760, %v63_v16  ;;  %v4663_v13 = vpack.c.bf16 %v1297_v36, %v1285_v18 }
  0x43   :  { %4604 = vmatprep.subr.bf16.mxu1 %v5307_v24  ;;  %1253 = vmatmul.mubr.f32.vlgmr.msra.gmra.mrb[0].mxu0 %v5508_v31  ;;  %v5578_v54 = vsub.f32 %v55_v27, %v1724_v47  ;;  %v5582_v12 = vsub.f32 %v60_v42, %v1726_v62  ;;  %v1816_v19 = vand.u32 4294901760, %v5567_v61  ;;  %v4665_v18 = vpack.c.bf16 %v1303_v59, %v1291_v29 }
  0x44   :  { %4638 = vmatpush1.bf16.msra.mxu0 %v4637_v37  ;;  %1363 = vmatprep.mubr.f32.mxu0 %v5099_v0  ;;  %v5584_v37 = vsub.f32 %v64_v46, %v1730_v63  ;;  %vm3995_vm2 = vcmask 1041409   ;;  %vm3998_vm3 = vcmask 58368  }
  0x45   :  { %908 = vmatmul.mubr.f32.vlgmr.msra.gmra.mrb[2].mxu1 %v5248_v40  ;;  %4640 = vmatprep.subr.bf16.mxu0 %v4639_v44  ;;  %v52_v40 = vld [vmem:[%s6250_s5 + $0x18] sm:$0xff]  ;;  %v1828_v52 = vand.u32 4294901760, %v5582_v12 }
  0x46   :  { %4606 = vmatpush1.bf16.msra.mxu1 %v5317_v32  ;;  %986 = vmatprep.mubr.f32.mxu1 %v5099_v0  ;;  %v1718_v21 = vand.u32 4294901760, %v52_v40 }
  0x47   :  { %4608 = vmatprep.subr.bf16.mxu1 %v5333_v45 }
  0x48   :  { %4642 = vmatpush1.bf16.msra.mxu0 %v4641_v41  ;;  %v5565_v51 = vsub.f32 %v52_v40, %v1718_v21  ;;  %v5592_v44 = vpack.c.bf16 %v1722_v25, %v1718_v21  ;;  %v5622_v40 = vpack.c.bf16 %v1730_v63, %v1726_v62  ;;  %v5728_v63 = vld [vmem:[%s6252_s7 + $0x18] sm:$0xff] }
  0x49   :  { %4644 = vmatprep.subr.bf16.mxu0 %v4643_v48  ;;  %v5602_v48 = vsub.f32 %v63_v16, %v1732_v9 }
  0x4a   :  { %4610 = vmatpush1.bf16.msra.mxu1 %v5343_v28  ;;  %v1804_v39 = vand.u32 4294901760, %v5565_v51 }
  0x4b   :  { %4612 = vmatprep.subr.bf16.mxu1 %v4611_v14  ;;  %1365 = vmatmul.mubr.f32.vlgmr.msra.gmra.mrb[0].mxu0 %v5444_v2  ;;  %v1810_v14 = vand.u32 4294901760, %v5576_v35 }
  0x4c   :  { %4646 = vmatpush1.bf16.msra.mxu0 %v4645_v15  ;;  %1451 = vmatprep.mubr.f32.mxu0 %v5099_v0  ;;  %v1822_v15 = vand.u32 4294901760, %v5578_v54  ;;  %v1805_v43 = vsub.f32 %v5565_v51, %v1804_v39 }
  0x4d   :  { %990 = vmatmul.mubr.f32.vlgmr.msra.gmra.mrb[2].mxu1 %v5268_v49  ;;  %4648 = vmatprep.subr.bf16.mxu0 %v4647_v17  ;;  %v59_v49 = vld [vmem:[%s6250_s5 + $0x50] sm:$0xff]  ;;  %v1811_v17 = vsub.f32 %v5576_v35, %v1810_v14 }
  0x4e   :  { %4614 = vmatpush1.bf16.msra.mxu1 %v4613_v8  ;;  %1084 = vmatprep.mubr.f32.mxu1 %v5099_v0  ;;  %v1728_v55 = vand.u32 4294901760, %v59_v49  ;;  %v1823_v57 = vsub.f32 %v5578_v54, %v1822_v15  ;;  %v1806_v60 = vand.u32 4294901760, %v1805_v43  ;;  %v4709_v42 = vpack.c.bf16 %v1822_v15, %v1810_v14 }
  0x4f   :  { %4616 = vmatprep.subr.bf16.mxu1 %v4615_v26  ;;  %v1812_v8 = vand.u32 4294901760, %v1811_v17 }
  0x50   :  { %4650 = vmatpush1.bf16.msra.mxu0 %v4649_v33  ;;  %v5600_v41 = vsub.f32 %v59_v49, %v1728_v55  ;;  %v4681_v36 = vpack.c.bf16 %v1732_v9, %v1728_v55  ;;  %v1824_v26 = vand.u32 4294901760, %v1823_v57 }
  0x51   :  { %4652 = vmatprep.subr.bf16.mxu0 %v5420_v23 }
  0x52   :  { %4618 = vmatpush1.bf16.msra.mxu1 %v4617_v38  ;;  %v1834_v58 = vand.u32 4294901760, %v5600_v41  ;;  %v4685_v59 = vpack.c.bf16 %v1824_v26, %v1812_v8  ;;  %v2288_v38 = vld [vmem:[%s6252_s7] sm:$0xff]  ;;  %v5819_v26 = vld [vmem:[%s6252_s7 + $0x48] sm:$0xff] }
  0x53   :  { %4620 = vmatprep.subr.bf16.mxu1 %v5307_v24  ;;  %1454 = vmatmul.mubr.f32.vlgmr.msra.gmra.mrb[0].mxu0 %v5456_v7  ;;  %v4659_v24 = vpack.c.bf16 %v1273_v5, %v1261_v3  ;;  %v1840_v3 = vand.u32 4294901760, %v5584_v37  ;;  %v4661_v5 = vpack.c.bf16 %v1279_v11, %v1267_v10  ;;  %v1846_v10 = vand.u32 4294901760, %v5602_v48  ;;  %v5814_v8 = vld [vmem:[%s6252_s7 + $0x40] sm:$0xff] }
  0x54   :  { %4654 = vmatpush1.bf16.msra.mxu0 %v5428_v56  ;;  %1532 = vmatprep.mubr.f32.mxu0 %v5099_v0  ;;  %v1835_v21 = vsub.f32 %v5600_v41, %v1834_v58 }
  0x55   :  { %1086 = vmatmul.mubr.f32.vlgmr.msra.gmra.mrb[2].mxu1 %v5236_v34  ;;  %4656 = vmatprep.subr.bf16.mxu0 %v5440_v20  ;;  %v1841_v11 = vsub.f32 %v5584_v37, %v1840_v3  ;;  %v1847_v22 = vsub.f32 %v5602_v48, %v1846_v10  ;;  %v4713_v46 = vpack.c.bf16 %v1846_v10, %v1834_v58 }
  0x56   :  { %4622 = vmatpush1.bf16.msra.mxu1 %v5317_v32  ;;  %1164 = vmatprep.mubr.f32.mxu1 %v5099_v0  ;;  %v1817_v32 = vsub.f32 %v5567_v61, %v1816_v19  ;;  %v1836_v25 = vand.u32 4294901760, %v1835_v21 }
  0x57   :  { %4624 = vmatprep.subr.bf16.mxu1 %v5333_v45  ;;  %v5620_v45 = vpack.c.bf16 %v1724_v47, %v1720_v50  ;;  %v1842_v29 = vand.u32 4294901760, %v1841_v11  ;;  %v1848_v53 = vand.u32 4294901760, %v1847_v22  ;;  %v2289_v50 = vld [vmem:[%s6252_s7 + $0x8] sm:$0xff]  ;;  %v2312_v47 = vand.u32 4294901760, %v2288_v38 }
  0x58   :  { %4658 = vmatpush1.bf16.msra.mxu0 %v5447_v6  ;;  %v1818_v1 = vand.u32 4294901760, %v1817_v32 }
  0x59   :  { %4660 = vmatprep.subr.bf16.mxu0 %v4659_v24  ;;  %v4689_v33 = vpack.c.bf16 %v1848_v53, %v1836_v25 }
  0x5a   :  { %4626 = vmatpush1.bf16.msra.mxu1 %v5343_v28  ;;  %v1829_v28 = vsub.f32 %v5582_v12, %v1828_v52  ;;  %v4683_v4 = vpack.c.bf16 %v1818_v1, %v1806_v60 }
  0x5b   :  { %4676 = vmatprep.subr.bf16.mxu1 %v5592_v44  ;;  %1536 = vmatmul.mubr.f32.vlgmr.msra.gmra.mrb[0].mxu0 %v5471_v30 }
  0x5c   :  { %4662 = vmatpush1.bf16.msra.mxu0 %v4661_v5  ;;  %1630 = vmatprep.mubr.f32.mxu0 %v5099_v0 }
  0x5d   :  { %1166 = vmatmul.mubr.f32.vlgmr.msra.gmra.mrb[2].mxu1 %v5236_v34  ;;  %4664 = vmatprep.subr.bf16.mxu0 %v4663_v13  ;;  %v1830_v34 = vand.u32 4294901760, %v1829_v28 }
  0x5e   :  { %4678 = vmatpush1.bf16.msra.mxu1 %v5620_v45  ;;  %1790 = vmatprep.mubr.f32.mxu1 %v5099_v0 }
  0x5f   :  { %4680 = vmatprep.subr.bf16.mxu1 %v5622_v40  ;;  %v4687_v27 = vpack.c.bf16 %v1842_v29, %v1830_v34  ;;  %v2339_v34 = vand.u32 4294901760, %v5819_v26 }
  0x60   :  { %4666 = vmatpush1.bf16.msra.mxu0 %v4665_v18 }
  0x61   :  { %4668 = vmatprep.subr.bf16.mxu0 %v5420_v23  ;;  %v4691_v23 = vpack.c.bf16 %v5567_v61, %v5565_v51  ;;  %v2315_v51 = vand.u32 4294901760, %v2289_v50  ;;  %v5716_v61 = vsub.f32 %v2288_v38, %v2312_v47 }
  0x62   :  { %4682 = vmatpush1.bf16.msra.mxu1 %v4681_v36 }
  0x63   :  { %4684 = vmatprep.subr.bf16.mxu1 %v4683_v4  ;;  %1632 = vmatmul.mubr.f32.vlgmr.msra.gmra.mrb[0].mxu0 %v5444_v2  ;;  %v5718_v62 = vsub.f32 %v2289_v50, %v2315_v51  ;;  %v2405_v49 = vand.u32 4294901760, %v5716_v61  ;;  %v2336_v4 = vand.u32 4294901760, %v5814_v8 }
  0x64   :  { %4670 = vmatpush1.bf16.msra.mxu0 %v5428_v56  ;;  %1710 = vmatprep.mubr.f32.mxu0 %v5099_v0  ;;  %v4693_v56 = vpack.c.bf16 %v5578_v54, %v5576_v35  ;;  %v2321_v54 = vand.u32 4294901760, %v5728_v63 }
  0x65   :  { %1796 = vmatmul.mubr.f32.vlgmr.msra.gmra.mrb[2].mxu1 %v5508_v31  ;;  %4672 = vmatprep.subr.bf16.mxu0 %v5440_v20  ;;  %v4695_v20 = vpack.c.bf16 %v5584_v37, %v5582_v12  ;;  %v4697_v31 = vpack.c.bf16 %v5602_v48, %v5600_v41  ;;  %v2412_v16 = vand.u32 4294901760, %v5718_v62  ;;  %v2406_v55 = vsub.f32 %v5716_v61, %v2405_v49 }
  0x66   :  { %4686 = vmatpush1.bf16.msra.mxu1 %v4685_v59  ;;  %1906 = vmatprep.mubr.f32.mxu1 %v5099_v0  ;;  %v5748_v37 = vsub.f32 %v5728_v63, %v2321_v54 }
  0x67   :  { %4688 = vmatprep.subr.bf16.mxu1 %v4687_v27  ;;  %v2413_v9 = vsub.f32 %v5718_v62, %v2412_v16  ;;  %v5835_v27 = vsub.f32 %v5814_v8, %v2336_v4 }
  0x68   :  { %4674 = vmatpush1.bf16.msra.mxu0 %v5447_v6  ;;  %v4707_v6 = vpack.c.bf16 %v1816_v19, %v1804_v39  ;;  %v5753_v39 = vld [vmem:[%s6252_s7 + $0x20] sm:$0xff]  ;;  %v5758_v19 = vld [vmem:[%s6252_s7 + $0x28] sm:$0xff]  ;;  %v2426_v48 = vand.u32 4294901760, %v5748_v37 }
  0x69   :  { %v2414_v24 = vand.u32 4294901760, %v2413_v9  ;;  %v2324_v14 = vand.u32 4294901760, %v5753_v39  ;;  %v2327_v15 = vand.u32 4294901760, %v5758_v19 }
  0x6a   :  { %4690 = vmatpush1.bf16.msra.mxu1 %v4689_v33  ;;  %v5840_v33 = vsub.f32 %v5819_v26, %v2339_v34 }
  0x6b   :  { %4692 = vmatprep.subr.bf16.mxu1 %v4691_v23  ;;  %1712 = vmatmul.mubr.f32.vlgmr.msra.gmra.mrb[0].mxu0 %v5444_v2  ;;  %v5778_v5 = vsub.f32 %v5758_v19, %v2327_v15 }
  0x6c   :  { %4256 = vmatprep.mubr.msk.f32.mxu0 %vm5101_vm1, %v5099_v0 }
  0x6d   :  { %1908 = vmatmul.mubr.f32.vlgmr.msra.gmra.mrb[2].mxu1 %v5444_v2  ;;  %v2440_v60 = vand.u32 4294901760, %v5778_v5 }
  0x6e   :  { %4694 = vmatpush1.bf16.msra.mxu1 %v4693_v56  ;;  %1994 = vmatprep.mubr.f32.mxu1 %v5099_v0  ;;  %v5842_v56 = vpack.c.bf16 %v2315_v51, %v2312_v47 }
  0x6f   :  { %4696 = vmatprep.subr.bf16.mxu1 %v4695_v20  ;;  %v5847_v20 = vld [vmem:[%s6252_s7 + $0x50] sm:$0xff] }
  0x70   :  { %v2342_v38 = vand.u32 4294901760, %v5847_v20 }
  0x72   :  { %4698 = vmatpush1.bf16.msra.mxu1 %v4697_v31  ;;  %v5852_v31 = vld [vmem:[%s6252_s7 + $0x58] sm:$0xff] }
  0x73   :  { %4700 = vmatprep.subr.bf16.mxu1 %v5592_v44  ;;  %v2345_v50 = vand.u32 4294901760, %v5852_v31 }
  0x75   :  { %1997 = vmatmul.mubr.f32.vlgmr.msra.gmra.mrb[2].mxu1 %v5456_v7  ;;  %v4711_v7 = vpack.c.bf16 %v1840_v3, %v1828_v52  ;;  %v2427_v52 = vsub.f32 %v5748_v37, %v2426_v48  ;;  %v5773_v3 = vsub.f32 %v5753_v39, %v2324_v14  ;;  %v2303_v39 = vld [vmem:[%s6252_s7 + $0x78] sm:$0xff] }
  0x76   :  { %4702 = vmatpush1.bf16.msra.mxu1 %v5620_v45  ;;  %2075 = vmatprep.mubr.f32.mxu1 %v5099_v0 }
  0x77   :  { %4704 = vmatprep.subr.bf16.mxu1 %v5622_v40  ;;  %v2428_v17 = vand.u32 4294901760, %v2427_v52  ;;  %v2433_v10 = vand.u32 4294901760, %v5773_v3 }
  0x79   :  { %v2434_v18 = vsub.f32 %v5773_v3, %v2433_v10 }
  0x7a   :  { %4706 = vmatpush1.bf16.msra.mxu1 %v4681_v36 }
  0x7b   :  { %4708 = vmatprep.subr.bf16.mxu1 %v4707_v6  ;;  %v2435_v29 = vand.u32 4294901760, %v2434_v18 }
  0x7d   :  { %2079 = vmatmul.mubr.f32.vlgmr.msra.gmra.mrb[2].mxu1 %v5471_v30  ;;  %v5100_v30 = vmov 0.0|0.0  }
  0x7e   :  { %4710 = vmatpush1.bf16.msra.mxu1 %v4709_v42  ;;  %2173 = vmatprep.mubr.f32.mxu1 %v5099_v0 }
  0x7f   :  { %4712 = vmatprep.subr.bf16.mxu1 %v4711_v7  ;;  %4747 = vmatprep.subr.bf16.mxu0 %v5100_v30  ;;  %v2461_v7 = vand.u32 4294901760, %v5835_v27 }
  0x81   :  { %v2462_v51 = vsub.f32 %v5835_v27, %v2461_v7 }
  0x82   :  { %4714 = vmatpush1.bf16.msra.mxu1 %v4713_v46  ;;  %v2468_v46 = vand.u32 4294901760, %v5840_v33 }
  0x83   :  { %4716 = vmatprep.subr.bf16.mxu1 %v5592_v44  ;;  %v2407_v44 = vand.u32 4294901760, %v2406_v55  ;;  %v2463_v63 = vand.u32 4294901760, %v2462_v51 }
  0x84   :  { %v2469_v55 = vsub.f32 %v5840_v33, %v2468_v46 }
  0x85   :  { %2175 = vmatmul.mubr.f32.vlgmr.msra.gmra.mrb[2].mxu1 %v5444_v2  ;;  %v4748_v43 = vpack.c.bf16 %v2414_v24, %v2407_v44  ;;  %v5876_v44 = vsub.f32 %v5847_v20, %v2342_v38  ;;  %v5881_v24 = vsub.f32 %v5852_v31, %v2345_v50 }
  0x86   :  { %4718 = vmatpush1.bf16.msra.mxu1 %v5620_v45  ;;  %2253 = vmatprep.mubr.f32.mxu1 %v5099_v0  ;;  %v5783_v45 = vld [vmem:[%s6252_s7 + $0x30] sm:$0xff] }
  0x87   :  { %4720 = vmatprep.subr.bf16.mxu1 %v5622_v40  ;;  %v5788_v40 = vld [vmem:[%s6252_s7 + $0x38] sm:$0xff]  ;;  %4749 = vmatpush3.bf16.msra.mxu0 %v4748_v43  ;;  %v2330_v57 = vand.u32 4294901760, %v5783_v45  ;;  %v5886_v43 = vld [vmem:[%s6252_s7 + $0x60] sm:$0xff]  ;;  %v2475_v52 = vand.u32 4294901760, %v5876_v44 }
  0x88   :  { %v2333_v58 = vand.u32 4294901760, %v5788_v40  ;;  %4750 = vmatprep.subr.bf16.mxu0 %v5100_v30 }
  0x89   :  { %v5798_v28 = vsub.f32 %v5783_v45, %v2330_v57 }
  0x8a   :  { %4722 = vmatpush1.bf16.msra.mxu1 %v4681_v36  ;;  %v5803_v11 = vsub.f32 %v5788_v40, %v2333_v58  ;;  %v2441_v36 = vsub.f32 %v5778_v5, %v2440_v60 }
  0x8b   :  { %4723 = vmatprep.subr.bf16.mxu1 %v5100_v30  ;;  %v2447_v21 = vand.u32 4294901760, %v5798_v28 }
  0x8c   :  { %v2454_v22 = vand.u32 4294901760, %v5803_v11  ;;  %v2442_v59 = vand.u32 4294901760, %v2441_v36  ;;  %v5910_v36 = vpack.c.bf16 %v2327_v15, %v2324_v14 }
  0x8d   :  { %2255 = vmatmul.mubr.f32.vlgmr.msra.gmra.mrb[2].mxu1 %v5444_v2  ;;  %v5723_v2 = vld [vmem:[%s6252_s7 + $0x10] sm:$0xff]  ;;  %v2448_v25 = vsub.f32 %v5798_v28, %v2447_v21 }
  0x8e   :  { %v2318_v35 = vand.u32 4294901760, %v5723_v2  ;;  %v2455_v53 = vsub.f32 %v5803_v11, %v2454_v22  ;;  %v4754_v23 = vpack.c.bf16 %v2442_v59, %v2435_v29  ;;  %4725 = vmatpush3.bf16.msra.mxu1 %v5842_v56  ;;  %v2476_v29 = vsub.f32 %v5876_v44, %v2475_v52  ;;  %4221 = vmatprep.mubr.msk.f32.mxu1 %vm5101_vm1, %v5099_v0 }
  0x8f   :  { %v2449_v6 = vand.u32 4294901760, %v2448_v25  ;;  %4726 = vmatprep.subr.bf16.mxu1 %v5100_v30  ;;  %v2302_v25 = vld [vmem:[%s6252_s7 + $0x70] sm:$0xff] }
  0x90   :  { %v5743_v12 = vsub.f32 %v5723_v2, %v2318_v35  ;;  %v2456_v42 = vand.u32 4294901760, %v2455_v53  ;;  %v5871_v9 = vpack.c.bf16 %v2321_v54, %v2318_v35  ;;  %v5891_v2 = vld [vmem:[%s6252_s7 + $0x68] sm:$0xff]  ;;  %v2470_v35 = vand.u32 4294901760, %v2469_v55 }
  0x91   :  { %v2348_v54 = vand.u32 4294901760, %v5886_v43  ;;  %v2354_v15 = vand.u32 4294901760, %v2302_v25  ;;  %v2357_v53 = vand.u32 4294901760, %v2303_v39 }
  0x92   :  { %v2419_v41 = vand.u32 4294901760, %v5743_v12  ;;  %v4757_v47 = vpack.c.bf16 %v2456_v42, %v2449_v6  ;;  %4728 = vmatpush3.bf16.msra.mxu1 %v5871_v9  ;;  %v5931_v42 = vpack.c.bf16 %v2333_v58, %v2330_v57 }
  0x93   :  { %4729 = vmatprep.subr.bf16.mxu1 %v5100_v30  ;;  %v5941_v55 = vsub.f32 %v2302_v25, %v2354_v15  ;;  %v5943_v45 = vsub.f32 %v2303_v39, %v2357_v53  ;;  %v4778_v39 = vpack.c.bf16 %v5778_v5, %v5773_v3 }
  0x94   :  { %v2420_v32 = vsub.f32 %v5743_v12, %v2419_v41 }
  0x95   :  { %v6258_v58 = vand.u32 4294901760, %v5941_v55 }
  0x96   :  { %v2421_v13 = vand.u32 4294901760, %v2420_v32  ;;  %v2351_v32 = vand.u32 4294901760, %v5891_v2  ;;  %4731 = vmatpush3.bf16.msra.mxu1 %v5910_v36 }
  0x97   :  { %4732 = vmatprep.subr.bf16.mxu1 %v5100_v30 }
  0x98   :  { %v4751_v1 = vpack.c.bf16 %v2428_v17, %v2421_v13  ;;  %v2482_v13 = vand.u32 4294901760, %v5881_v24  ;;  %v4760_v17 = vpack.c.bf16 %v2470_v35, %v2463_v63  ;;  %v5904_v18 = vsub.f32 %v5891_v2, %v2351_v32 }
  0x99   :  { %v5955_v2 = vpack.c.bf16 %v2339_v34, %v2336_v4  ;;  %v6257_v63 = vand.u32 4294901760, %v5943_v45  ;;  %v5971_v4 = vpack.c.bf16 %v2345_v50, %v2342_v38  ;;  %v5980_v25 = vpack.c.bf16 %v2351_v32, %v2348_v54 }
  0x9a   :  { %4752 = vmatpush3.bf16.msra.mxu0 %v4751_v1  ;;  %v5901_v1 = vsub.f32 %v5886_v43, %v2348_v54  ;;  %v2483_v59 = vsub.f32 %v5881_v24, %v2482_v13  ;;  %v2496_v14 = vand.u32 4294901760, %v5904_v18  ;;  %4734 = vmatpush3.bf16.msra.mxu1 %v5931_v42  ;;  %v4775_v38 = vpack.c.bf16 %v5748_v37, %v5743_v12 }
  0x9b   :  { %4753 = vmatprep.subr.bf16.mxu0 %v5100_v30  ;;  %4735 = vmatprep.subr.bf16.mxu1 %v5100_v30  ;;  %v5986_v50 = vpack.c.bf16 %v2357_v53, %v2354_v15  ;;  %v4781_v54 = vpack.c.bf16 %v5803_v11, %v5798_v28  ;;  %v4784_v32 = vpack.c.bf16 %v5840_v33, %v5835_v27  ;;  %v6259_v37 = vand.u32 4294901760, %v5941_v55  ;;  %v4026_v28 = vld [vmem:[#allocation2] ss:$0 sm:$0xff] }
  0x9c   :  { %v2489_v19 = vand.u32 4294901760, %v5901_v1  ;;  %v2484_v6 = vand.u32 4294901760, %v2483_v59  ;;  %v2497_v51 = vsub.f32 %v5904_v18, %v2496_v14  ;;  %v4772_v59 = vpack.c.bf16 %v5718_v62, %v5716_v61 }
  0x9d   :  { %v4790_v15 = vpack.c.bf16 %v5904_v18, %v5901_v1  ;;  %v4793_v53 = vpack.c.bf16 %v5943_v45, %v5941_v55  ;;  %v4826_v61 = vpack.c.bf16 %v2440_v60, %v2433_v10  ;;  %v4829_v62 = vpack.c.bf16 %v2454_v22, %v2447_v21  ;;  %v2955_v18 = vld [vmem:[%s6248_s3 + $0x18] sm:$0xff] }
  0x9e   :  { %4755 = vmatpush3.bf16.msra.mxu0 %v4754_v23  ;;  %v2477_v23 = vand.u32 4294901760, %v2476_v29  ;;  %v2498_v57 = vand.u32 4294901760, %v2497_v51  ;;  %v2511_v29 = vsub.f32 %v5943_v45, %v6257_v63  ;;  %4737 = vmatpush3.bf16.msra.mxu1 %v5955_v2  ;;  %v4838_v12 = vpack.c.bf16 %v2496_v14, %v2489_v19 }
  0x9f   :  { %4756 = vmatprep.subr.bf16.mxu0 %v5100_v30  ;;  %4738 = vmatprep.subr.bf16.mxu1 %v5100_v30  ;;  %v2960_v10 = vlaneseq }
  0xa0   :  { %v4763_v43 = vpack.c.bf16 %v2484_v6, %v2477_v23  ;;  %v2512_v26 = vand.u32 4294901760, %v2511_v29  ;;  %v4787_v23 = vpack.c.bf16 %v5881_v24, %v5876_v44  ;;  %v2952_v44 = vld [vmem:[%s6248_s3] sm:$0xff] }
  0xa1   :  { %v2961_v60 = vshrl.u32 %v2960_v10, 7 }
  0xa2   :  { %4758 = vmatpush3.bf16.msra.mxu0 %v4757_v47  ;;  %v2490_v47 = vsub.f32 %v5901_v1, %v2489_v19  ;;  %4740 = vmatpush3.bf16.msra.mxu1 %v5971_v4 }
  0xa3   :  { %4759 = vmatprep.subr.bf16.mxu0 %v5100_v30  ;;  %4741 = vmatprep.subr.bf16.mxu1 %v5100_v30  ;;  %v2962_v21 = vsub.s32 0, %v2961_v60 }
  0xa4   :  { %v2491_v40 = vand.u32 4294901760, %v2490_v47 }
  0xa6   :  { %4761 = vmatpush3.bf16.msra.mxu0 %v4760_v17  ;;  %v4766_v35 = vpack.c.bf16 %v2498_v57, %v2491_v40  ;;  %v2504_v17 = vsub.f32 %v5941_v55, %v6258_v58  ;;  %4743 = vmatpush3.bf16.msra.mxu1 %v5980_v25 }
  0xa7   :  { %4762 = vmatprep.subr.bf16.mxu0 %v5100_v30  ;;  %4744 = vmatprep.subr.bf16.mxu1 %v5100_v30 }
  0xa8   :  { %v2505_v8 = vand.u32 4294901760, %v2504_v17 }
  0xaa   :  { %4764 = vmatpush3.bf16.msra.mxu0 %v4763_v43  ;;  %v4769_v34 = vpack.c.bf16 %v2512_v26, %v2505_v8  ;;  %4746 = vmatpush3.bf16.msra.mxu1 %v5986_v50 }
  0xab   :  { %4765 = vmatprep.subr.bf16.mxu0 %v5100_v30  ;;  %4867 = vmatprep.subr.bf16.mxu1 %v5100_v30 }
  0xae   :  { %4767 = vmatpush3.bf16.msra.mxu0 %v4766_v35 }
  0xaf   :  { %4768 = vmatprep.subr.bf16.mxu0 %v5100_v30 }
  0xb2   :  { %4770 = vmatpush3.bf16.msra.mxu0 %v4769_v34 }
  0xb3   :  { %4771 = vmatprep.subr.bf16.mxu0 %v5100_v30 }
 0x100   :  { %v277_v20 = vpop.f32.mrb[0].mxu1 }
 0x101   :  { %v279_v31 = vpop.f32.mrb[1].mxu1 }
 0x13e   :  { %v1713_v6 = vpop.f32.mrb[0].mxu0 }
 0x13f   :  { %v4939_v47 = vadd.f32 %v1713_v6, %v277_v20  ;;  %v1715_v51 = vpop.f32.mrb[1].mxu0  ;;  %v2280_v20 = vld [vmem:[%s6247_s2] sm:$0x3] }
 0x140   :  { %v4940_v43 = vadd.f32 %v1715_v51, %v279_v31 }
 0x141   :  { %v4023_v57 = vmul.f32 -1.442695, %v4939_v47 }
 0x142   :  { %v4024_v40 = vmul.f32 -1.442695, %v4940_v43 }
 0x144   :  { %5018 = vpow2.f32 %v4024_v40 }
 0x145   :  { %5020 = vpow2.f32 %v4023_v57 }
 0x14e   :  { %v5019_v35 = vpop.eup %5018 }
 0x14f   :  { %v5021_v17 = vpop.eup %5020  ;;  %v2270_v29 = vadd.f32 1.0, %v5019_v35 }
 0x150   :  { %v2264_v8 = vadd.f32 1.0, %v5021_v17 }
 0x151   :  { %5022 = vrcp.f32 %v2270_v29 }
 0x152   :  { %5024 = vrcp.f32 %v2264_v8 }
 0x15b   :  { %v5023_v58 = vpop.eup %5022 }
 0x15c   :  { %v5025_v31 = vpop.eup %5024  ;;  %v2281_v47 = vmul.f32 %v5023_v58, %v2280_v20 }
 0x160   :  { %v2256_v26 = vpop.f32.mrb[2].mxu1 }
 0x161   :  { %5026 = vtanh.f32 %v2256_v26  ;;  %v2258_v34 = vpop.f32.mrb[3].mxu1 }
 0x162   :  { %v4025_v63 = vmul.f32 -1.442695, %v2258_v34 }
 0x164   :  { %5028 = vpow2.f32 %v4025_v63 }
 0x16b   :  { %v5027_v6 = vpop.eup %5026 }
 0x16c   :  { %v2282_v51 = vmul.f32 %v5027_v6, %v5025_v31 }
 0x16e   :  { %v5029_v43 = vpop.eup %5028  ;;  %v2283_v40 = vadd.f32 %v2282_v51, %v2281_v47 }
 0x16f   :  { %v2277_v57 = vadd.f32 1.0, %v5029_v43 }
 0x170   :  { %5030 = vtanh.f32 %v2283_v40  ;;  %2286 = vst [vmem:[%s6256_s11] sm:$0x3] %v2283_v40 }
 0x171   :  { %5032 = vrcp.f32 %v2277_v57 }
 0x17a   :  { %v5031_v35 = vpop.eup %5030 }
 0x17b   :  { %v5033_v63 = vpop.eup %5032 }
 0x17c   :  { %v2285_v17 = vmul.f32 %v5033_v63, %v5031_v35 }
 0x17e   :  { %2287 = vst [vmem:[%s6255_s10] sm:$0x3] %v2285_v17  ;;  %v6011_v29 = vand.u32 4294901760, %v2285_v17 }
 0x180   :  { %4257 = vmatmul.mubr.f32.vlgmr.msra.gmra.mrb[2].mxu0 %v6011_v29  ;;  %v2393_v58 = vsub.f32 %v2285_v17, %v6011_v29 }
 0x181   :  { %4773 = vmatpush3.bf16.msra.mxu0 %v4772_v59  ;;  %4291 = vmatprep.mubr.msk.f32.mxu0 %vm5101_vm1, %v5099_v0  ;;  %v4820_v59 = vpack.c.bf16 %v2412_v16, %v2405_v49  ;;  %v4832_v49 = vpack.c.bf16 %v2468_v46, %v2461_v7  ;;  %v4835_v16 = vpack.c.bf16 %v2482_v13, %v2475_v52  ;;  %v2981_v7 = vsub.s32 1, %v2961_v60 }
 0x182   :  { %4774 = vmatprep.subr.bf16.mxu0 %v5100_v30  ;;  %v2394_v8 = vand.u32 4294901760, %v2393_v58 }
 0x184   :  { %v2395_v26 = vsub.f32 %v2393_v58, %v2394_v8 }
 0x185   :  { %4776 = vmatpush3.bf16.msra.mxu0 %v4775_v38  ;;  %v4823_v38 = vpack.c.bf16 %v2426_v48, %v2419_v41  ;;  %v6260_v41 = vand.u32 4294901760, %v5943_v45 }
 0x186   :  { %4777 = vmatprep.subr.bf16.mxu0 %v5100_v30  ;;  %v2396_v34 = vand.u32 4294901760, %v2395_v26 }
 0x187   :  { %v4841_v48 = vpack.c.bf16 %v6260_v41, %v6259_v37 }
 0x188   :  { %4222 = vmatmul.mubr.f32.vlgmr.msra.gmra.mrb[4].mxu1 %v2396_v34 }
 0x189   :  { %4779 = vmatpush3.bf16.msra.mxu0 %v4778_v39  ;;  %4407 = vmatprep.mubr.msk.f32.mxu1 %vm5101_vm1, %v5099_v0 }
 0x18a   :  { %4780 = vmatprep.subr.bf16.mxu0 %v5100_v30 }
 0x18d   :  { %4782 = vmatpush3.bf16.msra.mxu0 %v4781_v54 }
 0x18e   :  { %4783 = vmatprep.subr.bf16.mxu0 %v5100_v30 }
 0x191   :  { %4785 = vmatpush3.bf16.msra.mxu0 %v4784_v32 }
 0x192   :  { %4786 = vmatprep.subr.bf16.mxu0 %v5100_v30 }
 0x195   :  { %4788 = vmatpush3.bf16.msra.mxu0 %v4787_v23 }
 0x196   :  { %4789 = vmatprep.subr.bf16.mxu0 %v5100_v30 }
 0x199   :  { %4791 = vmatpush3.bf16.msra.mxu0 %v4790_v15 }
 0x19a   :  { %4792 = vmatprep.subr.bf16.mxu0 %v5100_v30 }
 0x19d   :  { %4794 = vmatpush3.bf16.msra.mxu0 %v4793_v53 }
 0x19e   :  { %4795 = vmatprep.subr.bf16.mxu0 %v5100_v30 }
 0x1a0   :  { %4292 = vmatmul.mubr.f32.vlgmr.msra.gmra.mrb[2].mxu0 %v2393_v58 }
 0x1a1   :  { %4797 = vmatpush3.bf16.msra.mxu0 %v5842_v56  ;;  %4326 = vmatprep.mubr.msk.f32.mxu0 %vm5101_vm1, %v5099_v0 }
 0x1a2   :  { %4798 = vmatprep.subr.bf16.mxu0 %v5100_v30 }
 0x1a5   :  { %4800 = vmatpush3.bf16.msra.mxu0 %v5871_v9 }
 0x1a6   :  { %4801 = vmatprep.subr.bf16.mxu0 %v5100_v30 }
 0x1a9   :  { %4803 = vmatpush3.bf16.msra.mxu0 %v5910_v36 }
 0x1aa   :  { %4804 = vmatprep.subr.bf16.mxu0 %v5100_v30 }
 0x1ad   :  { %4806 = vmatpush3.bf16.msra.mxu0 %v5931_v42 }
 0x1ae   :  { %4807 = vmatprep.subr.bf16.mxu0 %v5100_v30 }
 0x1b1   :  { %4809 = vmatpush3.bf16.msra.mxu0 %v5955_v2 }
 0x1b2   :  { %4810 = vmatprep.subr.bf16.mxu0 %v5100_v30 }
 0x1b5   :  { %4812 = vmatpush3.bf16.msra.mxu0 %v5971_v4 }
 0x1b6   :  { %4813 = vmatprep.subr.bf16.mxu0 %v5100_v30 }
 0x1b9   :  { %4815 = vmatpush3.bf16.msra.mxu0 %v5980_v25 }
 0x1ba   :  { %4816 = vmatprep.subr.bf16.mxu0 %v5100_v30 }
 0x1bd   :  { %4818 = vmatpush3.bf16.msra.mxu0 %v5986_v50 }
 0x1be   :  { %4819 = vmatprep.subr.bf16.mxu0 %v5100_v30 }
 0x1c0   :  { %4327 = vmatmul.mubr.f32.vlgmr.msra.gmra.mrb[2].mxu0 %v2394_v8 }
 0x1c1   :  { %4821 = vmatpush3.bf16.msra.mxu0 %v4820_v59  ;;  %4361 = vmatprep.mubr.msk.f32.mxu0 %vm5101_vm1, %v5099_v0 }
 0x1c2   :  { %4822 = vmatprep.subr.bf16.mxu0 %v5100_v30 }
 0x1c5   :  { %4824 = vmatpush3.bf16.msra.mxu0 %v4823_v38 }
 0x1c6   :  { %4825 = vmatprep.subr.bf16.mxu0 %v5100_v30 }
 0x1c9   :  { %4827 = vmatpush3.bf16.msra.mxu0 %v4826_v61 }
 0x1ca   :  { %4828 = vmatprep.subr.bf16.mxu0 %v5100_v30 }
 0x1cd   :  { %4830 = vmatpush3.bf16.msra.mxu0 %v4829_v62 }
 0x1ce   :  { %4831 = vmatprep.subr.bf16.mxu0 %v5100_v30 }
 0x1d1   :  { %4833 = vmatpush3.bf16.msra.mxu0 %v4832_v49 }
 0x1d2   :  { %4834 = vmatprep.subr.bf16.mxu0 %v5100_v30 }
 0x1d5   :  { %4836 = vmatpush3.bf16.msra.mxu0 %v4835_v16 }
 0x1d6   :  { %4837 = vmatprep.subr.bf16.mxu0 %v5100_v30 }
 0x1d9   :  { %4839 = vmatpush3.bf16.msra.mxu0 %v4838_v12 }
 0x1da   :  { %4840 = vmatprep.subr.bf16.mxu0 %v5100_v30 }
 0x1dd   :  { %4842 = vmatpush3.bf16.msra.mxu0 %v4841_v48 }
 0x1de   :  { %4843 = vmatprep.subr.bf16.mxu0 %v5100_v30 }
 0x1e0   :  { %4362 = vmatmul.mubr.f32.vlgmr.msra.gmra.mrb[2].mxu0 %v6011_v29 }
 0x1e1   :  { %4845 = vmatpush3.bf16.msra.mxu0 %v5842_v56  ;;  %4396 = vmatprep.mubr.msk.f32.mxu0 %vm5101_vm1, %v5099_v0 }
 0x1e2   :  { %4846 = vmatprep.subr.bf16.mxu0 %v5100_v30 }
 0x1e5   :  { %4848 = vmatpush3.bf16.msra.mxu0 %v5871_v9  ;;  %v2954_v9 = vld [vmem:[%s6248_s3 + $0x10] sm:$0xff] }
 0x1e6   :  { %4849 = vmatprep.subr.bf16.mxu0 %v5100_v30 }
 0x1e9   :  { %4851 = vmatpush3.bf16.msra.mxu0 %v5910_v36  ;;  %v2953_v36 = vld [vmem:[%s6248_s3 + $0x8] sm:$0xff] }
 0x1ea   :  { %4852 = vmatprep.subr.bf16.mxu0 %v5100_v30 }
 0x1ed   :  { %4854 = vmatpush3.bf16.msra.mxu0 %v5931_v42  ;;  %v3014_v42 = vld [vmem:[%s6249_s4] sm:$0x1] }
 0x1ee   :  { %4855 = vmatprep.subr.bf16.mxu0 %v5100_v30 }
 0x1f1   :  { %4857 = vmatpush3.bf16.msra.mxu0 %v5955_v2  ;;  %v3017_v2 = vsel %vm82_vm0, %v3014_v42, 0 }
 0x1f2   :  { %4858 = vmatprep.subr.bf16.mxu0 %v5100_v30 }
 0x1f5   :  { %4860 = vmatpush3.bf16.msra.mxu0 %v5971_v4  ;;  %v6122_v4 = vand.u32 4294901760, %v3017_v2 }
 0x1f6   :  { %4861 = vmatprep.subr.bf16.mxu0 %v5100_v30 }
 0x1f7   :  { %v6125_v39 = vsub.f32 %v3017_v2, %v6122_v4 }
 0x1f9   :  { %4863 = vmatpush3.bf16.msra.mxu0 %v5980_v25  ;;  %v3090_v31 = vand.u32 4294901760, %v6125_v39 }
 0x1fa   :  { %4864 = vmatprep.subr.bf16.mxu0 %v5100_v30 }
 0x1fb   :  { %v3091_v35 = vsub.f32 %v6125_v39, %v3090_v31 }
 0x1fd   :  { %4866 = vmatpush3.bf16.msra.mxu0 %v5986_v50  ;;  %v3092_v59 = vand.u32 4294901760, %v3091_v35 }
 0x200   :  { %4397 = vmatmul.mubr.f32.vlgmr.msra.gmra.mrb[2].mxu0 %v6011_v29 }
 0x25b   :  { %v2398_v3 = vpop.f32.mrb[4].mxu1 }
 0x25c   :  { %v4223_v5 = vpop.f32.mrb[5].mxu1  ;;  %v2399_v11 = vadd.f32 %v4026_v28, %v2398_v3  ;;  %v2957_v3 = vld [vmem:[%s6248_s3 + $0x28] sm:$0xff] }
 0x25d   :  { %v2956_v5 = vld [vmem:[%s6248_s3 + $0x20] sm:$0xff] }
 0x2d3   :  { %v2948_v22 = vpop.f32.mrb[2].mxu0 }
 0x2d4   :  { %v4942_v27 = vadd.f32 %v2948_v22, %v2399_v11  ;;  %v4398_v33 = vpop.f32.mrb[3].mxu0  ;;  %v2959_v11 = vld [vmem:[%s6248_s3 + $0x38] sm:$0xff]  ;;  %v2958_v22 = vld [vmem:[%s6248_s3 + $0x30] sm:$0xff] }
 0x2d6   :  { %v2963_v56 = vrot.slane %v4942_v27, %v2962_v21  ;;  %v2982_v46 = vrot.slane %v4942_v27, %v2981_v7 }
 0x2d8   :  { %2973 = vbcast.lane.b32.xlu1 %v2963_v56, 272  ;;  %2965 = vbcast.lane.b32.xlu0 %v2963_v56, 256 }
 0x2dc   :  { %2977 = vbcast.lane.b32.xlu1 %v2963_v56, 280  ;;  %2969 = vbcast.lane.b32.xlu0 %v2963_v56, 264 }
 0x2e0   :  { %2988 = vbcast.lane.b32.xlu1 %v2982_v46, 264  ;;  %2984 = vbcast.lane.b32.xlu0 %v2982_v46, 256 }
 0x2e4   :  { %2996 = vbcast.lane.b32.xlu1 %v2982_v46, 280  ;;  %2992 = vbcast.lane.b32.xlu0 %v2982_v46, 272  ;;  %v3015_v46 = vld [vmem:[%s6249_s4 + $0x1] sm:$0x1]  ;;  %s5102_s4 = smov [#allocation5]  }
 0x2e5   :  { %s4006_s8 = sshll.u32 %s5102_s4, 4  ;;  %s4007_s8 = int_to_ptr.vmem [resolvable:$true] %s4006_s8 }
 0x2e6   :  { %s5072_s17 = scalar_lea.vmem %s4007_s8, 32  ;;  %p5077_p9 = scmp.lt.s32.totalorder %s4007_s8, %s4007_s8 }
 0x2e7   :  { %p5073_p8 = scmp.ne.s32.totalorder %s4007_s8, %s5072_s17  ;;  %p5078_p10 = scmp.lt.s32.totalorder %s5072_s17, %s5072_s17 }
 0x2e9   :  { %p5079_p11 = por %p5078_p10, %p5077_p9 }
 0x2eb   :  { %p5080_p12 = pnand %p5079_p11, %p5073_p8 }
 0x34a   :  { %v2974_v24 = vpop.permute.xlu1 %2973  ;;  %v2966_v52 = vpop.permute.xlu0 %2965 }
 0x34b   :  { %v3000_v13 = vadd.f32 %v2974_v24, %v2954_v9  ;;  %v2998_v1 = vadd.f32 %v2966_v52, %v2952_v44  ;;  %v3505_v52 = vsel %vm82_vm0, %v3015_v46, 0 }
 0x34d   :  { %5034 = vtanh.f32 %v3000_v13 }
 0x34e   :  { %5036 = vtanh.f32 %v2998_v1  ;;  %v2978_v19 = vpop.permute.xlu1 %2977  ;;  %v2970_v14 = vpop.permute.xlu0 %2969 }
 0x34f   :  { %v3001_v55 = vadd.f32 %v2978_v19, %v2955_v18  ;;  %v2999_v45 = vadd.f32 %v2970_v14, %v2953_v36  ;;  %v6195_v14 = vand.u32 4294901760, %v3505_v52 }
 0x351   :  { %5038 = vtanh.f32 %v3001_v55 }
 0x352   :  { %5040 = vtanh.f32 %v2999_v45  ;;  %v2989_v41 = vpop.permute.xlu1 %2988  ;;  %v2985_v48 = vpop.permute.xlu0 %2984 }
 0x353   :  { %v3003_v60 = vadd.f32 %v2989_v41, %v2957_v3  ;;  %v3002_v28 = vadd.f32 %v2985_v48, %v2956_v5 }
 0x355   :  { %5042 = vtanh.f32 %v3003_v60 }
 0x356   :  { %v2997_v21 = vpop.permute.xlu1 %2996  ;;  %v2993_v27 = vpop.permute.xlu0 %2992  ;;  %5044 = vtanh.f32 %v3002_v28 }
 0x357   :  { %v5035_v25 = vpop.eup %5034  ;;  %v3005_v56 = vadd.f32 %v2997_v21, %v2959_v11  ;;  %v3004_v7 = vadd.f32 %v2993_v27, %v2958_v22 }
 0x358   :  { %v5037_v50 = vpop.eup %5036  ;;  %v3026_v32 = vand.u32 4294901760, %v5035_v25 }
 0x359   :  { %v3020_v54 = vand.u32 4294901760, %v5037_v50  ;;  %5046 = vtanh.f32 %v3005_v56 }
 0x35a   :  { %v6130_v47 = vsub.f32 %v5035_v25, %v3026_v32  ;;  %5048 = vtanh.f32 %v3004_v7  ;;  %v3577_v25 = vsub.f32 %v3505_v52, %v6195_v14 }
 0x35b   :  { %v5039_v23 = vpop.eup %5038  ;;  %v6127_v15 = vsub.f32 %v5037_v50, %v3020_v54 }
 0x35c   :  { %v5041_v53 = vpop.eup %5040  ;;  %v3029_v20 = vand.u32 4294901760, %v5039_v23  ;;  %v3115_v58 = vand.u32 4294901760, %v6130_v47 }
 0x35d   :  { %v3023_v6 = vand.u32 4294901760, %v5041_v53  ;;  %v3101_v51 = vand.u32 4294901760, %v6127_v15 }
 0x35e   :  { %v6133_v43 = vsub.f32 %v5039_v23, %v3029_v20  ;;  %v6145_v8 = vpack.c.bf16 %v3029_v20, %v3026_v32  ;;  %v3116_v62 = vsub.f32 %v6130_v47, %v3115_v58  ;;  %v3578_v23 = vand.u32 4294901760, %v3577_v25 }
 0x35f   :  { %v6135_v40 = vpack.c.bf16 %v3023_v6, %v3020_v54  ;;  %v3107_v57 = vsub.f32 %v5041_v53, %v3023_v6  ;;  %v3102_v17 = vsub.f32 %v6127_v15, %v3101_v51  ;;  %v5043_v9 = vpop.eup %5042 }
 0x360   :  { %v3122_v63 = vand.u32 4294901760, %v6133_v43  ;;  %v3117_v12 = vand.u32 4294901760, %v3116_v62  ;;  %v4883_v33 = vpack.c.bf16 %v6133_v43, %v6130_v47  ;;  %v5045_v24 = vpop.eup %5044  ;;  %v3511_v36 = vand.u32 4294901760, %v5043_v9 }
 0x361   :  { %4869 = vmatpush3.bf16.msra.mxu1 %v6135_v40  ;;  %v3108_v29 = vand.u32 4294901760, %v3107_v57  ;;  %v3103_v38 = vand.u32 4294901760, %v3102_v17  ;;  %v4880_v10 = vpack.c.bf16 %v3107_v57, %v6127_v15  ;;  %v3508_v18 = vand.u32 4294901760, %v5045_v24 }
 0x362   :  { %4870 = vmatprep.subr.bf16.mxu1 %v5100_v30  ;;  %v3123_v34 = vsub.f32 %v6133_v43, %v3122_v63  ;;  %v4895_v1 = vpack.c.bf16 %v3122_v63, %v3115_v58  ;;  %v3595_v55 = vsub.f32 %v5043_v9, %v3511_v36  ;;  %v3579_v47 = vsub.f32 %v3577_v25, %v3578_v23 }
 0x363   :  { %v3109_v26 = vsub.f32 %v3107_v57, %v3108_v29  ;;  %v4892_v44 = vpack.c.bf16 %v3108_v29, %v3101_v51  ;;  %v5047_v13 = vpop.eup %5046  ;;  %v3588_v42 = vsub.f32 %v5045_v24, %v3508_v18  ;;  %v4904_v15 = vpack.c.bf16 %v3511_v36, %v3508_v18 }
 0x364   :  { %v3124_v16 = vand.u32 4294901760, %v3123_v34  ;;  %v5049_v19 = vpop.eup %5048  ;;  %v3517_v2 = vand.u32 4294901760, %v5047_v13  ;;  %v3596_v32 = vand.u32 4294901760, %v3595_v55  ;;  %v3580_v63 = vand.u32 4294901760, %v3579_v47 }
 0x365   :  { %4872 = vmatpush3.bf16.msra.mxu1 %v6145_v8  ;;  %v3110_v61 = vand.u32 4294901760, %v3109_v26  ;;  %v3514_v45 = vand.u32 4294901760, %v5049_v19  ;;  %v3589_v54 = vand.u32 4294901760, %v3588_v42 }
 0x366   :  { %4873 = vmatprep.subr.bf16.mxu1 %v5100_v30  ;;  %v4877_v37 = vpack.c.bf16 %v3124_v16, %v3117_v12  ;;  %v3597_v20 = vsub.f32 %v3595_v55, %v3596_v32 }
 0x367   :  { %v4874_v49 = vpack.c.bf16 %v3110_v61, %v3103_v38  ;;  %v3602_v50 = vsub.f32 %v5049_v19, %v3514_v45  ;;  %v3590_v53 = vsub.f32 %v3588_v42, %v3589_v54  ;;  %v4907_v51 = vpack.c.bf16 %v3517_v2, %v3514_v45 }
 0x368   :  { %4408 = vmatmul.mubr.f32.vlgmr.msra.gmra.mrb[6].mxu1 %v3092_v59  ;;  %v4928_v34 = vpack.c.bf16 %v3596_v32, %v3589_v54 }
 0x369   :  { %4875 = vmatpush3.bf16.msra.mxu1 %v4874_v49  ;;  %4418 = vmatprep.mubr.msk.f32.mxu1 %vm5101_vm1, %v5099_v0  ;;  %v3591_v43 = vand.u32 4294901760, %v3590_v53 }
 0x36a   :  { %4876 = vmatprep.subr.bf16.mxu1 %v5100_v30 }
 0x36d   :  { %4878 = vmatpush3.bf16.msra.mxu1 %v4877_v37 }
 0x36e   :  { %4879 = vmatprep.subr.bf16.mxu1 %v5100_v30 }
 0x370   :  { %4419 = vmatmul.mubr.f32.vlgmr.msra.gmra.mrb[6].mxu1 %v6122_v4 }
 0x371   :  { %4881 = vmatpush3.bf16.msra.mxu1 %v4880_v10  ;;  %4429 = vmatprep.mubr.msk.f32.mxu1 %vm5101_vm1, %v5099_v0 }
 0x372   :  { %4882 = vmatprep.subr.bf16.mxu1 %v5100_v30 }
 0x375   :  { %4884 = vmatpush3.bf16.msra.mxu1 %v4883_v33 }
 0x376   :  { %4885 = vmatprep.subr.bf16.mxu1 %v5100_v30 }
 0x378   :  { %4430 = vmatmul.mubr.f32.vlgmr.msra.gmra.mrb[6].mxu1 %v6125_v39  ;;  %v3609_v39 = vsub.f32 %v5047_v13, %v3517_v2 }
 0x379   :  { %4887 = vmatpush3.bf16.msra.mxu1 %v6135_v40  ;;  %4440 = vmatprep.mubr.msk.f32.mxu1 %vm5101_vm1, %v5099_v0 }
 0x37a   :  { %4888 = vmatprep.subr.bf16.mxu1 %v5100_v30  ;;  %v3610_v6 = vand.u32 4294901760, %v3609_v39  ;;  %v4919_v26 = vpack.c.bf16 %v3609_v39, %v3602_v50 }
 0x37c   :  { %v3611_v35 = vsub.f32 %v3609_v39, %v3610_v6 }
 0x37d   :  { %4890 = vmatpush3.bf16.msra.mxu1 %v6145_v8 }
 0x37e   :  { %4891 = vmatprep.subr.bf16.mxu1 %v5100_v30  ;;  %v3612_v58 = vand.u32 4294901760, %v3611_v35 }
 0x380   :  { %4441 = vmatmul.mubr.f32.vlgmr.msra.gmra.mrb[6].mxu1 %v3090_v31  ;;  %v3603_v31 = vand.u32 4294901760, %v3602_v50 }
 0x381   :  { %4893 = vmatpush3.bf16.msra.mxu1 %v4892_v44  ;;  %4451 = vmatprep.mubr.msk.f32.mxu1 %vm5101_vm1, %v5099_v0 }
 0x382   :  { %4894 = vmatprep.subr.bf16.mxu1 %v5100_v30  ;;  %v3604_v57 = vsub.f32 %v3602_v50, %v3603_v31  ;;  %v4931_v59 = vpack.c.bf16 %v3610_v6, %v3603_v31 }
 0x384   :  { %v3605_v29 = vand.u32 4294901760, %v3604_v57 }
 0x385   :  { %4896 = vmatpush3.bf16.msra.mxu1 %v4895_v1 }
 0x386   :  { %4897 = vmatprep.subr.bf16.mxu1 %v5100_v30 }
 0x388   :  { %4452 = vmatmul.mubr.f32.vlgmr.msra.gmra.mrb[6].mxu1 %v6122_v4 }
 0x389   :  { %4899 = vmatpush3.bf16.msra.mxu1 %v6135_v40  ;;  %4462 = vmatprep.mubr.msk.f32.mxu1 %vm5101_vm1, %v5099_v0  ;;  %v3598_v40 = vand.u32 4294901760, %v3597_v20 }
 0x38a   :  { %4900 = vmatprep.subr.bf16.mxu1 %v5100_v30 }
 0x38b   :  { %v4910_v17 = vpack.c.bf16 %v3598_v40, %v3591_v43 }
 0x38d   :  { %4902 = vmatpush3.bf16.msra.mxu1 %v6145_v8  ;;  %v4916_v8 = vpack.c.bf16 %v3595_v55, %v3588_v42 }
 0x38e   :  { %4903 = vmatprep.subr.bf16.mxu1 %v5100_v30 }
 0x390   :  { %4463 = vmatmul.mubr.f32.vlgmr.msra.gmra.mrb[6].mxu1 %v6122_v4  ;;  %v4913_v4 = vpack.c.bf16 %v3612_v58, %v3605_v29 }
 0x391   :  { %4905 = vmatpush3.bf16.msra.mxu1 %v4904_v15  ;;  %4473 = vmatprep.mubr.msk.f32.mxu1 %vm5101_vm1, %v5099_v0 }
 0x392   :  { %4906 = vmatprep.subr.bf16.mxu1 %v5100_v30 }
 0x395   :  { %4908 = vmatpush3.bf16.msra.mxu1 %v4907_v51 }
 0x396   :  { %4909 = vmatprep.subr.bf16.mxu1 %v5100_v30 }
 0x398   :  { %4474 = vmatmul.mubr.f32.vlgmr.msra.gmra.mrb[8].mxu1 %v3580_v63 }
 0x399   :  { %4911 = vmatpush3.bf16.msra.mxu1 %v4910_v17  ;;  %4484 = vmatprep.mubr.msk.f32.mxu1 %vm5101_vm1, %v5099_v0 }
 0x39a   :  { %4912 = vmatprep.subr.bf16.mxu1 %v5100_v30 }
 0x39d   :  { %4914 = vmatpush3.bf16.msra.mxu1 %v4913_v4 }
 0x39e   :  { %4915 = vmatprep.subr.bf16.mxu1 %v5100_v30 }
 0x3a0   :  { %4485 = vmatmul.mubr.f32.vlgmr.msra.gmra.mrb[8].mxu1 %v6195_v14 }
 0x3a1   :  { %4917 = vmatpush3.bf16.msra.mxu1 %v4916_v8  ;;  %4495 = vmatprep.mubr.msk.f32.mxu1 %vm5101_vm1, %v5099_v0 }
 0x3a2   :  { %4918 = vmatprep.subr.bf16.mxu1 %v5100_v30 }
 0x3a5   :  { %4920 = vmatpush3.bf16.msra.mxu1 %v4919_v26 }
 0x3a6   :  { %4921 = vmatprep.subr.bf16.mxu1 %v5100_v30 }
 0x3a8   :  { %4496 = vmatmul.mubr.f32.vlgmr.msra.gmra.mrb[8].mxu1 %v3577_v25 }
 0x3a9   :  { %4923 = vmatpush3.bf16.msra.mxu1 %v4904_v15  ;;  %4506 = vmatprep.mubr.msk.f32.mxu1 %vm5101_vm1, %v5099_v0 }
 0x3aa   :  { %4924 = vmatprep.subr.bf16.mxu1 %v5100_v30 }
 0x3ad   :  { %4926 = vmatpush3.bf16.msra.mxu1 %v4907_v51 }
 0x3ae   :  { %4927 = vmatprep.subr.bf16.mxu1 %v5100_v30 }
 0x3b0   :  { %4507 = vmatmul.mubr.f32.vlgmr.msra.gmra.mrb[8].mxu1 %v3578_v23 }
 0x3b1   :  { %4929 = vmatpush3.bf16.msra.mxu1 %v4928_v34  ;;  %4517 = vmatprep.mubr.msk.f32.mxu1 %vm5101_vm1, %v5099_v0 }
 0x3b2   :  { %4930 = vmatprep.subr.bf16.mxu1 %v5100_v30 }
 0x3b5   :  { %4932 = vmatpush3.bf16.msra.mxu1 %v4931_v59 }
 0x3b6   :  { %4933 = vmatprep.subr.bf16.mxu1 %v5100_v30 }
 0x3b8   :  { %4518 = vmatmul.mubr.f32.vlgmr.msra.gmra.mrb[8].mxu1 %v6195_v14 }
 0x3b9   :  { %4935 = vmatpush3.bf16.msra.mxu1 %v4904_v15  ;;  %4528 = vmatprep.mubr.msk.f32.mxu1 %vm5101_vm1, %v5099_v0 }
 0x3ba   :  { %4936 = vmatprep.subr.bf16.mxu1 %v5100_v30 }
 0x3bd   :  { %4938 = vmatpush3.bf16.msra.mxu1 %v4907_v51 }
 0x3c0   :  { %4529 = vmatmul.mubr.f32.vlgmr.msra.gmra.mrb[8].mxu1 %v6195_v14 }
 0x463   :  { %v3500_v38 = vpop.f32.mrb[6].mxu1 }
 0x464   :  { %v4464_v61 = vpop.f32.mrb[7].mxu1 }
 0x493   :  { %v3988_v62 = vpop.f32.mrb[8].mxu1 }
 0x494   :  { %v3994_v49 = vrot.slane %v3988_v62, 7  ;;  %v4530_v16 = vpop.f32.mrb[9].mxu1 }
 0x496   :  { %v3996_v12 = vsel %vm3995_vm2, %v3994_v49, %v3500_v38 }
 0x497   :  { %3999 = vst.msk [vmem:[#allocation5] sm:$0x3] %vm3998_vm3, %v3996_v12 }
 0x498   :  { %5083 = shalt.err (!%p5080_p12)
}
 0x499   :  { %s5084_s0 = scalar_lea.hbm %s6254_s9, 32 }
 0x49a   :  { %p5085_p13 = scmp.ne.s32.totalorder %s6254_s9, %s5084_s0  ;;  %p5088_p0 = scmp.lt.u32.totalorder %s5084_s0, %s6254_s9 }
 0x49c   :  { %p5090_p1 = pnand %p5088_p0, %p5085_p13 }
 0x49e   :  { %5093 = shalt.err (!%p5090_p1)
}
 0x49f   :  { %4009 = dma.vmem_to_hbm [thread:$0]  %s4007_s8, 32, %s6254_s9, [#allocation4]  }
 0x4a0   :  { %5096 = dma.done.wait [#allocation4], 32  }
 0x4a1   :  { %5097 = vsyncadd [#allocation4], 4294967264 }
 0x4a2   :  { %4021 = vsyncpa [#allocation3], 1 }
 0x4a3   :  { %4022 = vsyncpa [#allocation4], 1 }

</bundles_post_ra>
